<compile_context>
chip_gen: v7x
topology: tpu7x:2x2x1
jax: 0.10.0
libtpu: 0.0.40
codegen_flags: <defaults>
</compile_context>

<pallas_src>
import jax
import jax.numpy as jnp
from jax import lax
from jax.experimental import pallas as pl
from jax.experimental.pallas import tpu as pltpu

# ----- small "config" (stand-in for the original `config` module) -----
VOCAB = 64          # vocabulary size of utils.embedding
EMB_DIM = 16        # config.embedding_dim
HIDDEN = 32         # config.lstm_hidden_size
NUM_LAYERS = 1      # config.lstm_num_layers (dropout inactive for 1 layer)
SEQ_LEN = 8         # max_len
BATCH = 8           # >= 8 so f32 vreg sublanes are filled
NUM_CLASSES = 2
OUT_PAD = 128       # lane-dense padded output width


# -------------------- Pallas kernel --------------------

def _lstm_model_kernel(ids_ref,
                       a_cat_ref, whh_fw_ref, whh_bw_ref,
                       fc1_wf_ref, fc1_wb_ref, fc1_b_ref,
                       fc2_w_ref, fc2_b_ref,
                       o_ref,
                       gx_ref):
    """Whole model: embedding -> biLSTM -> concat -> fc1+relu -> fc2.

    ids_ref    : (T*B, 1) int32, time-major flattened token ids.
    a_cat_ref  : (VOCAB, 8H) bf16 = [emb@W_ih_fw + b_fw | emb@W_ih_bw + b_bw].
    whh_*_ref  : (H, 4H) bf16 recurrent weights.
    fc1_w{f,b} : (H, H) bf16 halves of fc1.weight.T; fc1_b: (1, H) f32.
    fc2_w_ref  : (H, 128) bf16 (cols >= NUM_CLASSES are zero); fc2_b: (1, 128) f32.
    o_ref      : (B, 128) f32 lane-dense logits (first NUM_CLASSES valid).
    gx_ref     : VMEM scratch (T*B, 8H) f32, precomputed x->gate terms (both dirs).
    """
    TB = ids_ref.shape[0]
    vocab = a_cat_ref.shape[0]
    H = whh_fw_ref.shape[0]
    G = 4 * H
    B = o_ref.shape[0]
    T = TB // B

    # --- prologue: embedding lookup + x@W_ih (+ folded bias), both directions,
    #     all timesteps, in ONE MXU matmul (bf16 one-hot is exact) ---
    onehot = (ids_ref[...] ==
              lax.broadcasted_iota(jnp.int32, (TB, vocab), 1)).astype(jnp.bfloat16)
    gx_ref[...] = jnp.dot(onehot, a_cat_ref[...],
                          preferred_element_type=jnp.float32)

    w_hh_fw = whh_fw_ref[...]            # bf16
    w_hh_bw = whh_bw_ref[...]            # bf16

    def cell(gx, h, c, w_hh):
        # bias already folded into gx; bf16 operands on the MXU, f32 accumulate.
        gates = gx + jnp.dot(h.astype(jnp.bfloat16), w_hh,
                             preferred_element_type=jnp.float32)
        sg = jax.nn.sigmoid(gates)       # full (B,4H) slab: one EUP chain
        i = sg[:, 0 * H:1 * H]
        f = sg[:, 1 * H:2 * H]
        o = sg[:, 3 * H:4 * H]
        g = jnp.tanh(gates[:, 2 * H:3 * H])
        c_new = f * c + i * g
        h_new = o * jnp.tanh(c_new)
        return h_new, c_new

    def step(t, carry):
        h_fw, c_fw, h_bw, c_bw = carry
        row_fw = pl.multiple_of(t * B, B)
        row_bw = pl.multiple_of((T - 1 - t) * B, B)
        gx_fw = gx_ref[pl.ds(row_fw, B), 0:G]        # forward lanes [0, 4H)
        gx_bw = gx_ref[pl.ds(row_bw, B), G:2 * G]    # backward lanes [4H, 8H)
        # fw / bw cells are data-independent -> LLO interleaves them.
        h_fw, c_fw = cell(gx_fw, h_fw, c_fw, w_hh_fw)
        h_bw, c_bw = cell(gx_bw, h_bw, c_bw, w_hh_bw)
        return h_fw, c_fw, h_bw, c_bw

    z0 = jnp.zeros((B, H), jnp.float32)
    h_fw, _, h_bw, _ = lax.fori_loop(0, T, step, (z0, z0, z0, z0), unroll=True)

    # --- fused MLP head: fc1 split per direction (no lane concat), lane-dense fc2 ---
    z1 = (jnp.dot(h_fw.astype(jnp.bfloat16), fc1_wf_ref[...],
                  preferred_element_type=jnp.float32)
          + jnp.dot(h_bw.astype(jnp.bfloat16), fc1_wb_ref[...],
                    preferred_element_type=jnp.float32)
          + fc1_b_ref[...])
    z1 = jnp.maximum(z1, 0.0)            # F.relu
    o_ref[...] = (jnp.dot(z1.astype(jnp.bfloat16), fc2_w_ref[...],
                          preferred_element_type=jnp.float32)
                  + fc2_b_ref[...])


# -------------------- wrapper --------------------

@jax.jit
def lstm_model_forward(token_ids, packed):
    """token_ids: [B, T] int32 -> logits [B, NUM_CLASSES]."""
    B, T = token_ids.shape
    H = HIDDEN
    # time-major flat ids, shape (T*B, 1): row t*B + b holds ids[b, t]
    ids_tm = jnp.transpose(token_ids).reshape(T * B, 1)

    n_inputs = 9
    cost = pl.CostEstimate(
        flops=(2 * T * B * VOCAB * 8 * H          # prologue gx matmul
               + T * 2 * (2 * B * H * 4 * H)      # recurrence
               + 2 * (2 * B * H * H)              # fc1 (two halves)
               + 2 * B * H * OUT_PAD),            # fc2 (padded)
        transcendentals=T * 2 * (B * 4 * H + 2 * B * H),
        bytes_accessed=(T * B * 4                 # ids
                        + VOCAB * 8 * H * 2       # a_cat (bf16)
                        + 2 * H * 4 * H * 2       # w_hh fw+bw (bf16)
                        + 2 * H * H * 2 + H * 4   # fc1 w halves + bias
                        + H * OUT_PAD * 2 + OUT_PAD * 4   # fc2 w + bias
                        + B * OUT_PAD * 4))       # output

    out_padded = pl.pallas_call(
        _lstm_model_kernel,
        out_shape=jax.ShapeDtypeStruct((B, OUT_PAD), jnp.float32),
        in_specs=[pl.BlockSpec(memory_space=pltpu.MemorySpace.VMEM)] * n_inputs,
        out_specs=pl.BlockSpec(memory_space=pltpu.MemorySpace.VMEM),
        scratch_shapes=[pltpu.VMEM((T * B, 8 * H), jnp.float32)],
        cost_estimate=cost,
    )(ids_tm,
      packed["a_cat"], packed["w_hh_fw"], packed["w_hh_bw"],
      packed["fc1_w_fw"], packed["fc1_w_bw"], packed["fc1_b"],
      packed["fc2_w_pad"], packed["fc2_b_pad"])

    return out_padded[:, :NUM_CLASSES]


# -------------------- parameter init & packing --------------------

def init_params(key):
    """Raw, PyTorch-equivalent parameters (weights stored transposed: [in, 4H])."""
    ks = jax.random.split(key, 16)
    H, E = HIDDEN, EMB_DIM
    k = 1.0 / jnp.sqrt(jnp.float32(H))

    def u(kk, shape):
        return jax.random.uniform(kk, shape, jnp.float32, -k, k)

    return {
        "embedding": jax.random.normal(ks[0], (VOCAB, E), jnp.float32),
        # forward direction (gate order i, f, g, o)
        "w_ih_fw": u(ks[1], (E, 4 * H)),
        "w_hh_fw": u(ks[2], (H, 4 * H)),
        "b_fw": u(ks[3], (1, 4 * H)) + u(ks[4], (1, 4 * H)),   # b_ih + b_hh
        # backward direction
        "w_ih_bw": u(ks[5], (E, 4 * H)),
        "w_hh_bw": u(ks[6], (H, 4 * H)),
        "b_bw": u(ks[7], (1, 4 * H)) + u(ks[8], (1, 4 * H)),
        # heads
        "fc1_w_t": u(ks[9], (2 * H, H)),
        "fc1_b": u(ks[10], (1, H)),
        "fc2_w_t": u(ks[11], (H, NUM_CLASSES)),
        "fc2_b": u(ks[12], (1, NUM_CLASSES)),
    }


def pack_params(p):
    """One-time packing for the kernel (done outside jit, not per call)."""
    H = HIDDEN
    bf16 = jnp.bfloat16
    # biases folded into the packed input->gate matrices (one-hot rows sum to 1)
    a_fw = (p["embedding"] @ p["w_ih_fw"] + p["b_fw"]).astype(bf16)
    a_bw = (p["embedding"] @ p["w_ih_bw"] + p["b_bw"]).astype(bf16)
    # fc2 padded to a lane-dense width of 128 (zero columns beyond NUM_CLASSES)
    fc2_w_pad = jnp.zeros((H, OUT_PAD), jnp.float32
                          ).at[:, :NUM_CLASSES].set(p["fc2_w_t"]).astype(bf16)
    fc2_b_pad = jnp.zeros((1, OUT_PAD), jnp.float32
                          ).at[:, :NUM_CLASSES].set(p["fc2_b"])
    return {
        "a_cat": jnp.concatenate([a_fw, a_bw], axis=1),     # (VOCAB, 8H) bf16
        "w_hh_fw": p["w_hh_fw"].astype(bf16),
        "w_hh_bw": p["w_hh_bw"].astype(bf16),
        # fc1 weight split per direction (avoids in-kernel concat)
        "fc1_w_fw": p["fc1_w_t"][:H].astype(bf16),
        "fc1_w_bw": p["fc1_w_t"][H:].astype(bf16),
        "fc1_b": p["fc1_b"],
        "fc2_w_pad": fc2_w_pad,
        "fc2_b_pad": fc2_b_pad,
    }


# -------------------- pure-JAX reference (correctness check) --------------------

def reference_forward(token_ids, params):
    x = jnp.take(params["embedding"], token_ids, axis=0)       # [B, T, E]

    def run_dir(xs, w_ih, w_hh, b):                            # xs: [T, B, E]
        def step(carry, x_t):
            h, c = carry
            gates = x_t @ w_ih + h @ w_hh + b
            i, f, g, o = jnp.split(gates, 4, axis=-1)
            i, f, o = jax.nn.sigmoid(i), jax.nn.sigmoid(f), jax.nn.sigmoid(o)
            g = jnp.tanh(g)
            c = f * c + i * g
            h = o * jnp.tanh(c)
            return (h, c), None

        B = xs.shape[1]
        h0 = jnp.zeros((B, HIDDEN), jnp.float32)
        (h, _), _ = jax.lax.scan(step, (h0, h0), xs)
        return h

    x_tbe = jnp.transpose(x, (1, 0, 2))
    h_fw = run_dir(x_tbe, params["w_ih_fw"], params["w_hh_fw"], params["b_fw"])
    h_bw = run_dir(x_tbe[::-1], params["w_ih_bw"], params["w_hh_bw"], params["b_bw"])
    h_cat = jnp.concatenate([h_fw, h_bw], axis=-1)
    z1 = jnp.maximum(h_cat @ params["fc1_w_t"] + params["fc1_b"], 0.0)
    return z1 @ params["fc2_w_t"] + params["fc2_b"]


# -------------------- main --------------------

if __name__ == "__main__":
    key = jax.random.PRNGKey(0)
    k_param, k_ids = jax.random.split(key)
    params = init_params(k_param)
    packed = pack_params(params)
    token_ids = jax.random.randint(k_ids, (BATCH, SEQ_LEN), 0, VOCAB, dtype=jnp.int32)

    out = lstm_model_forward(token_ids, packed)
    out = jax.block_until_ready(out)
    assert out.shape == (BATCH, NUM_CLASSES), out.shape

    ref = reference_forward(token_ids, params)
    # tolerance loosened vs f32 version: MXU operands are bf16 (recurrent
    # accumulation amplifies bf16 input rounding), state/accum remain f32.
    assert jnp.allclose(out, ref, atol=2e-2, rtol=2e-2), (out, ref)

    print("KERNEL_OK")
</pallas_src>

<mosaic_0001>
module attributes {stable_mosaic.version = 11 : i64} {
  func.func @_lstm_model_kernel(%arg0: memref<64x1xi32, #tpu.memory_space<vmem>>, %arg1: memref<64x256xbf16, #tpu.memory_space<vmem>>, %arg2: memref<32x128xbf16, #tpu.memory_space<vmem>>, %arg3: memref<32x128xbf16, #tpu.memory_space<vmem>>, %arg4: memref<32x32xbf16, #tpu.memory_space<vmem>>, %arg5: memref<32x32xbf16, #tpu.memory_space<vmem>>, %arg6: memref<1x32xf32, #tpu.memory_space<vmem>>, %arg7: memref<32x128xbf16, #tpu.memory_space<vmem>>, %arg8: memref<1x128xf32, #tpu.memory_space<vmem>>, %arg9: memref<8x128xf32, #tpu.memory_space<vmem>>, %arg10: memref<64x256xf32, #tpu.memory_space<vmem>>) attributes {dimension_semantics = [], scalar_prefetch = 0 : i64, scratch_operands = 1 : i64, tpu.core_type = #tpu.core_type<tc>} {
    %c0 = arith.constant 0 : index
    %c0_0 = arith.constant 0 : index
    %0 = vector.load %arg0[%c0, %c0_0] : memref<64x1xi32, #tpu.memory_space<vmem>>, vector<64x1xi32>
    %1 = tpu.iota {dimensions = array<i32: 1>} : vector<64x64xi32>
    %2 = vector.broadcast %0 : vector<64x1xi32> to vector<64x64xi32>
    %3 = arith.cmpi eq, %2, %1 : vector<64x64xi32>
    %4 = arith.extui %3 : vector<64x64xi1> to vector<64x64xi32>
    %5 = arith.sitofp %4 : vector<64x64xi32> to vector<64x64xf32>
    %6 = arith.truncf %5 : vector<64x64xf32> to vector<64x64xbf16>
    %c0_1 = arith.constant 0 : index
    %c0_2 = arith.constant 0 : index
    %7 = vector.load %arg1[%c0_1, %c0_2] : memref<64x256xbf16, #tpu.memory_space<vmem>>, vector<64x256xbf16>
    %cst = arith.constant dense<0.000000e+00> : vector<64x256xf32>
    %8 = tpu.matmul %6, %7, %cst {dimension_numbers = #tpu.dot_dimension_numbers<[1], [0], [0], [1], [0, 0, 1, 1], [], []>} : vector<64x64xbf16>, vector<64x256xbf16>, vector<64x256xf32> -> vector<64x256xf32>
    %c0_3 = arith.constant 0 : index
    %c0_4 = arith.constant 0 : index
    %9 = vector.load %arg10[%c0_3, %c0_4] : memref<64x256xf32, #tpu.memory_space<vmem>>, vector<64x256xf32>
    tpu.vector_store %arg10[%c0_3, %c0_4], %8 {strides = array<i32>} : memref<64x256xf32, #tpu.memory_space<vmem>>, vector<64x256xf32>,
    %c0_5 = arith.constant 0 : index
    %c0_6 = arith.constant 0 : index
    %10 = vector.load %arg2[%c0_5, %c0_6] : memref<32x128xbf16, #tpu.memory_space<vmem>>, vector<32x128xbf16>
    %c0_7 = arith.constant 0 : index
    %c0_8 = arith.constant 0 : index
    %11 = vector.load %arg3[%c0_7, %c0_8] : memref<32x128xbf16, #tpu.memory_space<vmem>>, vector<32x128xbf16>
    %cst_9 = arith.constant 0.000000e+00 : f32
    %12 = vector.broadcast %cst_9 : f32 to vector<8x32xf32>
    %c0_i32 = arith.constant 0 : i32
    %c8_i32 = arith.constant 8 : i32
    %13 = arith.muli %c0_i32, %c8_i32 : i32
    %14 = tpu.assume_multiple %13, 8 : i32
    %c7_i32 = arith.constant 7 : i32
    %15 = arith.subi %c7_i32, %c0_i32 : i32
    %c8_i32_10 = arith.constant 8 : i32
    %16 = arith.muli %15, %c8_i32_10 : i32
    %17 = tpu.assume_multiple %16, 8 : i32
    %18 = arith.index_cast %14 : i32 to index
    %c0_11 = arith.constant 0 : index
    %19 = vector.load %arg10[%18, %c0_11] : memref<64x256xf32, #tpu.memory_space<vmem>>, vector<8x128xf32>
    %20 = arith.index_cast %17 : i32 to index
    %c128 = arith.constant 128 : index
    %21 = vector.load %arg10[%20, %c128] : memref<64x256xf32, #tpu.memory_space<vmem>>, vector<8x128xf32>
    %22 = arith.truncf %12 : vector<8x32xf32> to vector<8x32xbf16>
    %cst_12 = arith.constant dense<0.000000e+00> : vector<8x128xf32>
    %23 = tpu.matmul %22, %10, %cst_12 {dimension_numbers = #tpu.dot_dimension_numbers<[1], [0], [0], [1], [0, 0, 1, 1], [], []>} : vector<8x32xbf16>, vector<32x128xbf16>, vector<8x128xf32> -> vector<8x128xf32>
    %24 = arith.addf %19, %23 : vector<8x128xf32>
    %25 = arith.negf %24 : vector<8x128xf32>
    %26 = math.exp %25 : vector<8x128xf32>
    %cst_13 = arith.constant 1.000000e+00 : f32
    %27 = vector.broadcast %cst_13 : f32 to vector<8x128xf32>
    %28 = arith.addf %27, %26 : vector<8x128xf32>
    %29 = arith.divf %27, %28 : vector<8x128xf32>
    %30 = vector.extract_strided_slice %29 {offsets = [0, 0], sizes = [8, 32], strides = [1, 1]} : vector<8x128xf32> to vector<8x32xf32>
    %31 = vector.extract_strided_slice %29 {offsets = [0, 32], sizes = [8, 32], strides = [1, 1]} : vector<8x128xf32> to vector<8x32xf32>
    %32 = vector.extract_strided_slice %29 {offsets = [0, 96], sizes = [8, 32], strides = [1, 1]} : vector<8x128xf32> to vector<8x32xf32>
    %33 = vector.extract_strided_slice %24 {offsets = [0, 64], sizes = [8, 32], strides = [1, 1]} : vector<8x128xf32> to vector<8x32xf32>
    %34 = math.tanh %33 : vector<8x32xf32>
    %35 = arith.mulf %31, %12 : vector<8x32xf32>
    %36 = arith.mulf %30, %34 : vector<8x32xf32>
    %37 = arith.addf %35, %36 : vector<8x32xf32>
    %38 = math.tanh %37 : vector<8x32xf32>
    %39 = arith.mulf %32, %38 : vector<8x32xf32>
    %40 = arith.truncf %12 : vector<8x32xf32> to vector<8x32xbf16>
    %cst_14 = arith.constant dense<0.000000e+00> : vector<8x128xf32>
    %41 = tpu.matmul %40, %11, %cst_14 {dimension_numbers = #tpu.dot_dimension_numbers<[1], [0], [0], [1], [0, 0, 1, 1], [], []>} : vector<8x32xbf16>, vector<32x128xbf16>, vector<8x128xf32> -> vector<8x128xf32>
    %42 = arith.addf %21, %41 : vector<8x128xf32>
    %43 = arith.negf %42 : vector<8x128xf32>
    %44 = math.exp %43 : vector<8x128xf32>
    %cst_15 = arith.constant 1.000000e+00 : f32
    %45 = vector.broadcast %cst_15 : f32 to vector<8x128xf32>
    %46 = arith.addf %45, %44 : vector<8x128xf32>
    %47 = arith.divf %45, %46 : vector<8x128xf32>
    %48 = vector.extract_strided_slice %47 {offsets = [0, 0], sizes = [8, 32], strides = [1, 1]} : vector<8x128xf32> to vector<8x32xf32>
    %49 = vector.extract_strided_slice %47 {offsets = [0, 32], sizes = [8, 32], strides = [1, 1]} : vector<8x128xf32> to vector<8x32xf32>
    %50 = vector.extract_strided_slice %47 {offsets = [0, 96], sizes = [8, 32], strides = [1, 1]} : vector<8x128xf32> to vector<8x32xf32>
    %51 = vector.extract_strided_slice %42 {offsets = [0, 64], sizes = [8, 32], strides = [1, 1]} : vector<8x128xf32> to vector<8x32xf32>
    %52 = math.tanh %51 : vector<8x32xf32>
    %53 = arith.mulf %49, %12 : vector<8x32xf32>
    %54 = arith.mulf %48, %52 : vector<8x32xf32>
    %55 = arith.addf %53, %54 : vector<8x32xf32>
    %56 = math.tanh %55 : vector<8x32xf32>
    %57 = arith.mulf %50, %56 : vector<8x32xf32>
    %c1_i32 = arith.constant 1 : i32
    %c8_i32_16 = arith.constant 8 : i32
    %58 = arith.muli %c1_i32, %c8_i32_16 : i32
    %59 = tpu.assume_multiple %58, 8 : i32
    %c7_i32_17 = arith.constant 7 : i32
    %60 = arith.subi %c7_i32_17, %c1_i32 : i32
    %c8_i32_18 = arith.constant 8 : i32
    %61 = arith.muli %60, %c8_i32_18 : i32
    %62 = tpu.assume_multiple %61, 8 : i32
    %63 = arith.index_cast %59 : i32 to index
    %c0_19 = arith.constant 0 : index
    %64 = vector.load %arg10[%63, %c0_19] : memref<64x256xf32, #tpu.memory_space<vmem>>, vector<8x128xf32>
    %65 = arith.index_cast %62 : i32 to index
    %c128_20 = arith.constant 128 : index
    %66 = vector.load %arg10[%65, %c128_20] : memref<64x256xf32, #tpu.memory_space<vmem>>, vector<8x128xf32>
    %67 = arith.truncf %39 : vector<8x32xf32> to vector<8x32xbf16>
    %cst_21 = arith.constant dense<0.000000e+00> : vector<8x128xf32>
    %68 = tpu.matmul %67, %10, %cst_21 {dimension_numbers = #tpu.dot_dimension_numbers<[1], [0], [0], [1], [0, 0, 1, 1], [], []>} : vector<8x32xbf16>, vector<32x128xbf16>, vector<8x128xf32> -> vector<8x128xf32>
    %69 = arith.addf %64, %68 : vector<8x128xf32>
    %70 = arith.negf %69 : vector<8x128xf32>
    %71 = math.exp %70 : vector<8x128xf32>
    %cst_22 = arith.constant 1.000000e+00 : f32
    %72 = vector.broadcast %cst_22 : f32 to vector<8x128xf32>
    %73 = arith.addf %72, %71 : vector<8x128xf32>
    %74 = arith.divf %72, %73 : vector<8x128xf32>
    %75 = vector.extract_strided_slice %74 {offsets = [0, 0], sizes = [8, 32], strides = [1, 1]} : vector<8x128xf32> to vector<8x32xf32>
    %76 = vector.extract_strided_slice %74 {offsets = [0, 32], sizes = [8, 32], strides = [1, 1]} : vector<8x128xf32> to vector<8x32xf32>
    %77 = vector.extract_strided_slice %74 {offsets = [0, 96], sizes = [8, 32], strides = [1, 1]} : vector<8x128xf32> to vector<8x32xf32>
    %78 = vector.extract_strided_slice %69 {offsets = [0, 64], sizes = [8, 32], strides = [1, 1]} : vector<8x128xf32> to vector<8x32xf32>
    %79 = math.tanh %78 : vector<8x32xf32>
    %80 = arith.mulf %76, %37 : vector<8x32xf32>
    %81 = arith.mulf %75, %79 : vector<8x32xf32>
    %82 = arith.addf %80, %81 : vector<8x32xf32>
    %83 = math.tanh %82 : vector<8x32xf32>
    %84 = arith.mulf %77, %83 : vector<8x32xf32>
    %85 = arith.truncf %57 : vector<8x32xf32> to vector<8x32xbf16>
    %cst_23 = arith.constant dense<0.000000e+00> : vector<8x128xf32>
    %86 = tpu.matmul %85, %11, %cst_23 {dimension_numbers = #tpu.dot_dimension_numbers<[1], [0], [0], [1], [0, 0, 1, 1], [], []>} : vector<8x32xbf16>, vector<32x128xbf16>, vector<8x128xf32> -> vector<8x128xf32>
    %87 = arith.addf %66, %86 : vector<8x128xf32>
    %88 = arith.negf %87 : vector<8x128xf32>
    %89 = math.exp %88 : vector<8x128xf32>
    %cst_24 = arith.constant 1.000000e+00 : f32
    %90 = vector.broadcast %cst_24 : f32 to vector<8x128xf32>
    %91 = arith.addf %90, %89 : vector<8x128xf32>
    %92 = arith.divf %90, %91 : vector<8x128xf32>
    %93 = vector.extract_strided_slice %92 {offsets = [0, 0], sizes = [8, 32], strides = [1, 1]} : vector<8x128xf32> to vector<8x32xf32>
    %94 = vector.extract_strided_slice %92 {offsets = [0, 32], sizes = [8, 32], strides = [1, 1]} : vector<8x128xf32> to vector<8x32xf32>
    %95 = vector.extract_strided_slice %92 {offsets = [0, 96], sizes = [8, 32], strides = [1, 1]} : vector<8x128xf32> to vector<8x32xf32>
    %96 = vector.extract_strided_slice %87 {offsets = [0, 64], sizes = [8, 32], strides = [1, 1]} : vector<8x128xf32> to vector<8x32xf32>
    %97 = math.tanh %96 : vector<8x32xf32>
    %98 = arith.mulf %94, %55 : vector<8x32xf32>
    %99 = arith.mulf %93, %97 : vector<8x32xf32>
    %100 = arith.addf %98, %99 : vector<8x32xf32>
    %101 = math.tanh %100 : vector<8x32xf32>
    %102 = arith.mulf %95, %101 : vector<8x32xf32>
    %c2_i32 = arith.constant 2 : i32
    %c8_i32_25 = arith.constant 8 : i32
    %103 = arith.muli %c2_i32, %c8_i32_25 : i32
    %104 = tpu.assume_multiple %103, 8 : i32
    %c7_i32_26 = arith.constant 7 : i32
    %105 = arith.subi %c7_i32_26, %c2_i32 : i32
    %c8_i32_27 = arith.constant 8 : i32
    %106 = arith.muli %105, %c8_i32_27 : i32
    %107 = tpu.assume_multiple %106, 8 : i32
    %108 = arith.index_cast %104 : i32 to index
    %c0_28 = arith.constant 0 : index
    %109 = vector.load %arg10[%108, %c0_28] : memref<64x256xf32, #tpu.memory_space<vmem>>, vector<8x128xf32>
    %110 = arith.index_cast %107 : i32 to index
    %c128_29 = arith.constant 128 : index
    %111 = vector.load %arg10[%110, %c128_29] : memref<64x256xf32, #tpu.memory_space<vmem>>, vector<8x128xf32>
    %112 = arith.truncf %84 : vector<8x32xf32> to vector<8x32xbf16>
    %cst_30 = arith.constant dense<0.000000e+00> : vector<8x128xf32>
    %113 = tpu.matmul %112, %10, %cst_30 {dimension_numbers = #tpu.dot_dimension_numbers<[1], [0], [0], [1], [0, 0, 1, 1], [], []>} : vector<8x32xbf16>, vector<32x128xbf16>, vector<8x128xf32> -> vector<8x128xf32>
    %114 = arith.addf %109, %113 : vector<8x128xf32>
    %115 = arith.negf %114 : vector<8x128xf32>
    %116 = math.exp %115 : vector<8x128xf32>
    %cst_31 = arith.constant 1.000000e+00 : f32
    %117 = vector.broadcast %cst_31 : f32 to vector<8x128xf32>
    %118 = arith.addf %117, %116 : vector<8x128xf32>
    %119 = arith.divf %117, %118 : vector<8x128xf32>
    %120 = vector.extract_strided_slice %119 {offsets = [0, 0], sizes = [8, 32], strides = [1, 1]} : vector<8x128xf32> to vector<8x32xf32>
    %121 = vector.extract_strided_slice %119 {offsets = [0, 32], sizes = [8, 32], strides = [1, 1]} : vector<8x128xf32> to vector<8x32xf32>
    %122 = vector.extract_strided_slice %119 {offsets = [0, 96], sizes = [8, 32], strides = [1, 1]} : vector<8x128xf32> to vector<8x32xf32>
    %123 = vector.extract_strided_slice %114 {offsets = [0, 64], sizes = [8, 32], strides = [1, 1]} : vector<8x128xf32> to vector<8x32xf32>
    %124 = math.tanh %123 : vector<8x32xf32>
    %125 = arith.mulf %121, %82 : vector<8x32xf32>
    %126 = arith.mulf %120, %124 : vector<8x32xf32>
    %127 = arith.addf %125, %126 : vector<8x32xf32>
    %128 = math.tanh %127 : vector<8x32xf32>
    %129 = arith.mulf %122, %128 : vector<8x32xf32>
    %130 = arith.truncf %102 : vector<8x32xf32> to vector<8x32xbf16>
    %cst_32 = arith.constant dense<0.000000e+00> : vector<8x128xf32>
    %131 = tpu.matmul %130, %11, %cst_32 {dimension_numbers = #tpu.dot_dimension_numbers<[1], [0], [0], [1], [0, 0, 1, 1], [], []>} : vector<8x32xbf16>, vector<32x128xbf16>, vector<8x128xf32> -> vector<8x128xf32>
    %132 = arith.addf %111, %131 : vector<8x128xf32>
    %133 = arith.negf %132 : vector<8x128xf32>
    %134 = math.exp %133 : vector<8x128xf32>
    %cst_33 = arith.constant 1.000000e+00 : f32
    %135 = vector.broadcast %cst_33 : f32 to vector<8x128xf32>
    %136 = arith.addf %135, %134 : vector<8x128xf32>
    %137 = arith.divf %135, %136 : vector<8x128xf32>
    %138 = vector.extract_strided_slice %137 {offsets = [0, 0], sizes = [8, 32], strides = [1, 1]} : vector<8x128xf32> to vector<8x32xf32>
    %139 = vector.extract_strided_slice %137 {offsets = [0, 32], sizes = [8, 32], strides = [1, 1]} : vector<8x128xf32> to vector<8x32xf32>
    %140 = vector.extract_strided_slice %137 {offsets = [0, 96], sizes = [8, 32], strides = [1, 1]} : vector<8x128xf32> to vector<8x32xf32>
    %141 = vector.extract_strided_slice %132 {offsets = [0, 64], sizes = [8, 32], strides = [1, 1]} : vector<8x128xf32> to vector<8x32xf32>
    %142 = math.tanh %141 : vector<8x32xf32>
    %143 = arith.mulf %139, %100 : vector<8x32xf32>
    %144 = arith.mulf %138, %142 : vector<8x32xf32>
    %145 = arith.addf %143, %144 : vector<8x32xf32>
    %146 = math.tanh %145 : vector<8x32xf32>
    %147 = arith.mulf %140, %146 : vector<8x32xf32>
    %c3_i32 = arith.constant 3 : i32
    %c8_i32_34 = arith.constant 8 : i32
    %148 = arith.muli %c3_i32, %c8_i32_34 : i32
    %149 = tpu.assume_multiple %148, 8 : i32
    %c7_i32_35 = arith.constant 7 : i32
    %150 = arith.subi %c7_i32_35, %c3_i32 : i32
    %c8_i32_36 = arith.constant 8 : i32
    %151 = arith.muli %150, %c8_i32_36 : i32
    %152 = tpu.assume_multiple %151, 8 : i32
    %153 = arith.index_cast %149 : i32 to index
    %c0_37 = arith.constant 0 : index
    %154 = vector.load %arg10[%153, %c0_37] : memref<64x256xf32, #tpu.memory_space<vmem>>, vector<8x128xf32>
    %155 = arith.index_cast %152 : i32 to index
    %c128_38 = arith.constant 128 : index
    %156 = vector.load %arg10[%155, %c128_38] : memref<64x256xf32, #tpu.memory_space<vmem>>, vector<8x128xf32>
    %157 = arith.truncf %129 : vector<8x32xf32> to vector<8x32xbf16>
    %cst_39 = arith.constant dense<0.000000e+00> : vector<8x128xf32>
    %158 = tpu.matmul %157, %10, %cst_39 {dimension_numbers = #tpu.dot_dimension_numbers<[1], [0], [0], [1], [0, 0, 1, 1], [], []>} : vector<8x32xbf16>, vector<32x128xbf16>, vector<8x128xf32> -> vector<8x128xf32>
    %159 = arith.addf %154, %158 : vector<8x128xf32>
    %160 = arith.negf %159 : vector<8x128xf32>
    %161 = math.exp %160 : vector<8x128xf32>
    %cst_40 = arith.constant 1.000000e+00 : f32
    %162 = vector.broadcast %cst_40 : f32 to vector<8x128xf32>
    %163 = arith.addf %162, %161 : vector<8x128xf32>
    %164 = arith.divf %162, %163 : vector<8x128xf32>
    %165 = vector.extract_strided_slice %164 {offsets = [0, 0], sizes = [8, 32], strides = [1, 1]} : vector<8x128xf32> to vector<8x32xf32>
    %166 = vector.extract_strided_slice %164 {offsets = [0, 32], sizes = [8, 32], strides = [1, 1]} : vector<8x128xf32> to vector<8x32xf32>
    %167 = vector.extract_strided_slice %164 {offsets = [0, 96], sizes = [8, 32], strides = [1, 1]} : vector<8x128xf32> to vector<8x32xf32>
    %168 = vector.extract_strided_slice %159 {offsets = [0, 64], sizes = [8, 32], strides = [1, 1]} : vector<8x128xf32> to vector<8x32xf32>
    %169 = math.tanh %168 : vector<8x32xf32>
    %170 = arith.mulf %166, %127 : vector<8x32xf32>
    %171 = arith.mulf %165, %169 : vector<8x32xf32>
    %172 = arith.addf %170, %171 : vector<8x32xf32>
    %173 = math.tanh %172 : vector<8x32xf32>
    %174 = arith.mulf %167, %173 : vector<8x32xf32>
    %175 = arith.truncf %147 : vector<8x32xf32> to vector<8x32xbf16>
    %cst_41 = arith.constant dense<0.000000e+00> : vector<8x128xf32>
    %176 = tpu.matmul %175, %11, %cst_41 {dimension_numbers = #tpu.dot_dimension_numbers<[1], [0], [0], [1], [0, 0, 1, 1], [], []>} : vector<8x32xbf16>, vector<32x128xbf16>, vector<8x128xf32> -> vector<8x128xf32>
    %177 = arith.addf %156, %176 : vector<8x128xf32>
    %178 = arith.negf %177 : vector<8x128xf32>
    %179 = math.exp %178 : vector<8x128xf32>
    %cst_42 = arith.constant 1.000000e+00 : f32
    %180 = vector.broadcast %cst_42 : f32 to vector<8x128xf32>
    %181 = arith.addf %180, %179 : vector<8x128xf32>
    %182 = arith.divf %180, %181 : vector<8x128xf32>
    %183 = vector.extract_strided_slice %182 {offsets = [0, 0], sizes = [8, 32], strides = [1, 1]} : vector<8x128xf32> to vector<8x32xf32>
    %184 = vector.extract_strided_slice %182 {offsets = [0, 32], sizes = [8, 32], strides = [1, 1]} : vector<8x128xf32> to vector<8x32xf32>
    %185 = vector.extract_strided_slice %182 {offsets = [0, 96], sizes = [8, 32], strides = [1, 1]} : vector<8x128xf32> to vector<8x32xf32>
    %186 = vector.extract_strided_slice %177 {offsets = [0, 64], sizes = [8, 32], strides = [1, 1]} : vector<8x128xf32> to vector<8x32xf32>
    %187 = math.tanh %186 : vector<8x32xf32>
    %188 = arith.mulf %184, %145 : vector<8x32xf32>
    %189 = arith.mulf %183, %187 : vector<8x32xf32>
    %190 = arith.addf %188, %189 : vector<8x32xf32>
    %191 = math.tanh %190 : vector<8x32xf32>
    %192 = arith.mulf %185, %191 : vector<8x32xf32>
    %c4_i32 = arith.constant 4 : i32
    %c8_i32_43 = arith.constant 8 : i32
    %193 = arith.muli %c4_i32, %c8_i32_43 : i32
    %194 = tpu.assume_multiple %193, 8 : i32
    %c7_i32_44 = arith.constant 7 : i32
    %195 = arith.subi %c7_i32_44, %c4_i32 : i32
    %c8_i32_45 = arith.constant 8 : i32
    %196 = arith.muli %195, %c8_i32_45 : i32
    %197 = tpu.assume_multiple %196, 8 : i32
    %198 = arith.index_cast %194 : i32 to index
    %c0_46 = arith.constant 0 : index
    %199 = vector.load %arg10[%198, %c0_46] : memref<64x256xf32, #tpu.memory_space<vmem>>, vector<8x128xf32>
    %200 = arith.index_cast %197 : i32 to index
    %c128_47 = arith.constant 128 : index
    %201 = vector.load %arg10[%200, %c128_47] : memref<64x256xf32, #tpu.memory_space<vmem>>, vector<8x128xf32>
    %202 = arith.truncf %174 : vector<8x32xf32> to vector<8x32xbf16>
    %cst_48 = arith.constant dense<0.000000e+00> : vector<8x128xf32>
    %203 = tpu.matmul %202, %10, %cst_48 {dimension_numbers = #tpu.dot_dimension_numbers<[1], [0], [0], [1], [0, 0, 1, 1], [], []>} : vector<8x32xbf16>, vector<32x128xbf16>, vector<8x128xf32> -> vector<8x128xf32>
    %204 = arith.addf %199, %203 : vector<8x128xf32>
    %205 = arith.negf %204 : vector<8x128xf32>
    %206 = math.exp %205 : vector<8x128xf32>
    %cst_49 = arith.constant 1.000000e+00 : f32
    %207 = vector.broadcast %cst_49 : f32 to vector<8x128xf32>
    %208 = arith.addf %207, %206 : vector<8x128xf32>
    %209 = arith.divf %207, %208 : vector<8x128xf32>
    %210 = vector.extract_strided_slice %209 {offsets = [0, 0], sizes = [8, 32], strides = [1, 1]} : vector<8x128xf32> to vector<8x32xf32>
    %211 = vector.extract_strided_slice %209 {offsets = [0, 32], sizes = [8, 32], strides = [1, 1]} : vector<8x128xf32> to vector<8x32xf32>
    %212 = vector.extract_strided_slice %209 {offsets = [0, 96], sizes = [8, 32], strides = [1, 1]} : vector<8x128xf32> to vector<8x32xf32>
    %213 = vector.extract_strided_slice %204 {offsets = [0, 64], sizes = [8, 32], strides = [1, 1]} : vector<8x128xf32> to vector<8x32xf32>
    %214 = math.tanh %213 : vector<8x32xf32>
    %215 = arith.mulf %211, %172 : vector<8x32xf32>
    %216 = arith.mulf %210, %214 : vector<8x32xf32>
    %217 = arith.addf %215, %216 : vector<8x32xf32>
    %218 = math.tanh %217 : vector<8x32xf32>
    %219 = arith.mulf %212, %218 : vector<8x32xf32>
    %220 = arith.truncf %192 : vector<8x32xf32> to vector<8x32xbf16>
    %cst_50 = arith.constant dense<0.000000e+00> : vector<8x128xf32>
    %221 = tpu.matmul %220, %11, %cst_50 {dimension_numbers = #tpu.dot_dimension_numbers<[1], [0], [0], [1], [0, 0, 1, 1], [], []>} : vector<8x32xbf16>, vector<32x128xbf16>, vector<8x128xf32> -> vector<8x128xf32>
    %222 = arith.addf %201, %221 : vector<8x128xf32>
    %223 = arith.negf %222 : vector<8x128xf32>
    %224 = math.exp %223 : vector<8x128xf32>
    %cst_51 = arith.constant 1.000000e+00 : f32
    %225 = vector.broadcast %cst_51 : f32 to vector<8x128xf32>
    %226 = arith.addf %225, %224 : vector<8x128xf32>
    %227 = arith.divf %225, %226 : vector<8x128xf32>
    %228 = vector.extract_strided_slice %227 {offsets = [0, 0], sizes = [8, 32], strides = [1, 1]} : vector<8x128xf32> to vector<8x32xf32>
    %229 = vector.extract_strided_slice %227 {offsets = [0, 32], sizes = [8, 32], strides = [1, 1]} : vector<8x128xf32> to vector<8x32xf32>
    %230 = vector.extract_strided_slice %227 {offsets = [0, 96], sizes = [8, 32], strides = [1, 1]} : vector<8x128xf32> to vector<8x32xf32>
    %231 = vector.extract_strided_slice %222 {offsets = [0, 64], sizes = [8, 32], strides = [1, 1]} : vector<8x128xf32> to vector<8x32xf32>
    %232 = math.tanh %231 : vector<8x32xf32>
    %233 = arith.mulf %229, %190 : vector<8x32xf32>
    %234 = arith.mulf %228, %232 : vector<8x32xf32>
    %235 = arith.addf %233, %234 : vector<8x32xf32>
    %236 = math.tanh %235 : vector<8x32xf32>
    %237 = arith.mulf %230, %236 : vector<8x32xf32>
    %c5_i32 = arith.constant 5 : i32
    %c8_i32_52 = arith.constant 8 : i32
    %238 = arith.muli %c5_i32, %c8_i32_52 : i32
    %239 = tpu.assume_multiple %238, 8 : i32
    %c7_i32_53 = arith.constant 7 : i32
    %240 = arith.subi %c7_i32_53, %c5_i32 : i32
    %c8_i32_54 = arith.constant 8 : i32
    %241 = arith.muli %240, %c8_i32_54 : i32
    %242 = tpu.assume_multiple %241, 8 : i32
    %243 = arith.index_cast %239 : i32 to index
    %c0_55 = arith.constant 0 : index
    %244 = vector.load %arg10[%243, %c0_55] : memref<64x256xf32, #tpu.memory_space<vmem>>, vector<8x128xf32>
    %245 = arith.index_cast %242 : i32 to index
    %c128_56 = arith.constant 128 : index
    %246 = vector.load %arg10[%245, %c128_56] : memref<64x256xf32, #tpu.memory_space<vmem>>, vector<8x128xf32>
    %247 = arith.truncf %219 : vector<8x32xf32> to vector<8x32xbf16>
    %cst_57 = arith.constant dense<0.000000e+00> : vector<8x128xf32>
    %248 = tpu.matmul %247, %10, %cst_57 {dimension_numbers = #tpu.dot_dimension_numbers<[1], [0], [0], [1], [0, 0, 1, 1], [], []>} : vector<8x32xbf16>, vector<32x128xbf16>, vector<8x128xf32> -> vector<8x128xf32>
    %249 = arith.addf %244, %248 : vector<8x128xf32>
    %250 = arith.negf %249 : vector<8x128xf32>
    %251 = math.exp %250 : vector<8x128xf32>
    %cst_58 = arith.constant 1.000000e+00 : f32
    %252 = vector.broadcast %cst_58 : f32 to vector<8x128xf32>
    %253 = arith.addf %252, %251 : vector<8x128xf32>
    %254 = arith.divf %252, %253 : vector<8x128xf32>
    %255 = vector.extract_strided_slice %254 {offsets = [0, 0], sizes = [8, 32], strides = [1, 1]} : vector<8x128xf32> to vector<8x32xf32>
    %256 = vector.extract_strided_slice %254 {offsets = [0, 32], sizes = [8, 32], strides = [1, 1]} : vector<8x128xf32> to vector<8x32xf32>
    %257 = vector.extract_strided_slice %254 {offsets = [0, 96], sizes = [8, 32], strides = [1, 1]} : vector<8x128xf32> to vector<8x32xf32>
    %258 = vector.extract_strided_slice %249 {offsets = [0, 64], sizes = [8, 32], strides = [1, 1]} : vector<8x128xf32> to vector<8x32xf32>
    %259 = math.tanh %258 : vector<8x32xf32>
    %260 = arith.mulf %256, %217 : vector<8x32xf32>
    %261 = arith.mulf %255, %259 : vector<8x32xf32>
    %262 = arith.addf %260, %261 : vector<8x32xf32>
    %263 = math.tanh %262 : vector<8x32xf32>
    %264 = arith.mulf %257, %263 : vector<8x32xf32>
    %265 = arith.truncf %237 : vector<8x32xf32> to vector<8x32xbf16>
    %cst_59 = arith.constant dense<0.000000e+00> : vector<8x128xf32>
    %266 = tpu.matmul %265, %11, %cst_59 {dimension_numbers = #tpu.dot_dimension_numbers<[1], [0], [0], [1], [0, 0, 1, 1], [], []>} : vector<8x32xbf16>, vector<32x128xbf16>, vector<8x128xf32> -> vector<8x128xf32>
    %267 = arith.addf %246, %266 : vector<8x128xf32>
    %268 = arith.negf %267 : vector<8x128xf32>
    %269 = math.exp %268 : vector<8x128xf32>
    %cst_60 = arith.constant 1.000000e+00 : f32
    %270 = vector.broadcast %cst_60 : f32 to vector<8x128xf32>
    %271 = arith.addf %270, %269 : vector<8x128xf32>
    %272 = arith.divf %270, %271 : vector<8x128xf32>
    %273 = vector.extract_strided_slice %272 {offsets = [0, 0], sizes = [8, 32], strides = [1, 1]} : vector<8x128xf32> to vector<8x32xf32>
    %274 = vector.extract_strided_slice %272 {offsets = [0, 32], sizes = [8, 32], strides = [1, 1]} : vector<8x128xf32> to vector<8x32xf32>
    %275 = vector.extract_strided_slice %272 {offsets = [0, 96], sizes = [8, 32], strides = [1, 1]} : vector<8x128xf32> to vector<8x32xf32>
    %276 = vector.extract_strided_slice %267 {offsets = [0, 64], sizes = [8, 32], strides = [1, 1]} : vector<8x128xf32> to vector<8x32xf32>
    %277 = math.tanh %276 : vector<8x32xf32>
    %278 = arith.mulf %274, %235 : vector<8x32xf32>
    %279 = arith.mulf %273, %277 : vector<8x32xf32>
    %280 = arith.addf %278, %279 : vector<8x32xf32>
    %281 = math.tanh %280 : vector<8x32xf32>
    %282 = arith.mulf %275, %281 : vector<8x32xf32>
    %c6_i32 = arith.constant 6 : i32
    %c8_i32_61 = arith.constant 8 : i32
    %283 = arith.muli %c6_i32, %c8_i32_61 : i32
    %284 = tpu.assume_multiple %283, 8 : i32
    %c7_i32_62 = arith.constant 7 : i32
    %285 = arith.subi %c7_i32_62, %c6_i32 : i32
    %c8_i32_63 = arith.constant 8 : i32
    %286 = arith.muli %285, %c8_i32_63 : i32
    %287 = tpu.assume_multiple %286, 8 : i32
    %288 = arith.index_cast %284 : i32 to index
    %c0_64 = arith.constant 0 : index
    %289 = vector.load %arg10[%288, %c0_64] : memref<64x256xf32, #tpu.memory_space<vmem>>, vector<8x128xf32>
    %290 = arith.index_cast %287 : i32 to index
    %c128_65 = arith.constant 128 : index
    %291 = vector.load %arg10[%290, %c128_65] : memref<64x256xf32, #tpu.memory_space<vmem>>, vector<8x128xf32>
    %292 = arith.truncf %264 : vector<8x32xf32> to vector<8x32xbf16>
    %cst_66 = arith.constant dense<0.000000e+00> : vector<8x128xf32>
    %293 = tpu.matmul %292, %10, %cst_66 {dimension_numbers = #tpu.dot_dimension_numbers<[1], [0], [0], [1], [0, 0, 1, 1], [], []>} : vector<8x32xbf16>, vector<32x128xbf16>, vector<8x128xf32> -> vector<8x128xf32>
    %294 = arith.addf %289, %293 : vector<8x128xf32>
    %295 = arith.negf %294 : vector<8x128xf32>
    %296 = math.exp %295 : vector<8x128xf32>
    %cst_67 = arith.constant 1.000000e+00 : f32
    %297 = vector.broadcast %cst_67 : f32 to vector<8x128xf32>
    %298 = arith.addf %297, %296 : vector<8x128xf32>
    %299 = arith.divf %297, %298 : vector<8x128xf32>
    %300 = vector.extract_strided_slice %299 {offsets = [0, 0], sizes = [8, 32], strides = [1, 1]} : vector<8x128xf32> to vector<8x32xf32>
    %301 = vector.extract_strided_slice %299 {offsets = [0, 32], sizes = [8, 32], strides = [1, 1]} : vector<8x128xf32> to vector<8x32xf32>
    %302 = vector.extract_strided_slice %299 {offsets = [0, 96], sizes = [8, 32], strides = [1, 1]} : vector<8x128xf32> to vector<8x32xf32>
    %303 = vector.extract_strided_slice %294 {offsets = [0, 64], sizes = [8, 32], strides = [1, 1]} : vector<8x128xf32> to vector<8x32xf32>
    %304 = math.tanh %303 : vector<8x32xf32>
    %305 = arith.mulf %301, %262 : vector<8x32xf32>
    %306 = arith.mulf %300, %304 : vector<8x32xf32>
    %307 = arith.addf %305, %306 : vector<8x32xf32>
    %308 = math.tanh %307 : vector<8x32xf32>
    %309 = arith.mulf %302, %308 : vector<8x32xf32>
    %310 = arith.truncf %282 : vector<8x32xf32> to vector<8x32xbf16>
    %cst_68 = arith.constant dense<0.000000e+00> : vector<8x128xf32>
    %311 = tpu.matmul %310, %11, %cst_68 {dimension_numbers = #tpu.dot_dimension_numbers<[1], [0], [0], [1], [0, 0, 1, 1], [], []>} : vector<8x32xbf16>, vector<32x128xbf16>, vector<8x128xf32> -> vector<8x128xf32>
    %312 = arith.addf %291, %311 : vector<8x128xf32>
    %313 = arith.negf %312 : vector<8x128xf32>
    %314 = math.exp %313 : vector<8x128xf32>
    %cst_69 = arith.constant 1.000000e+00 : f32
    %315 = vector.broadcast %cst_69 : f32 to vector<8x128xf32>
    %316 = arith.addf %315, %314 : vector<8x128xf32>
    %317 = arith.divf %315, %316 : vector<8x128xf32>
    %318 = vector.extract_strided_slice %317 {offsets = [0, 0], sizes = [8, 32], strides = [1, 1]} : vector<8x128xf32> to vector<8x32xf32>
    %319 = vector.extract_strided_slice %317 {offsets = [0, 32], sizes = [8, 32], strides = [1, 1]} : vector<8x128xf32> to vector<8x32xf32>
    %320 = vector.extract_strided_slice %317 {offsets = [0, 96], sizes = [8, 32], strides = [1, 1]} : vector<8x128xf32> to vector<8x32xf32>
    %321 = vector.extract_strided_slice %312 {offsets = [0, 64], sizes = [8, 32], strides = [1, 1]} : vector<8x128xf32> to vector<8x32xf32>
    %322 = math.tanh %321 : vector<8x32xf32>
    %323 = arith.mulf %319, %280 : vector<8x32xf32>
    %324 = arith.mulf %318, %322 : vector<8x32xf32>
    %325 = arith.addf %323, %324 : vector<8x32xf32>
    %326 = math.tanh %325 : vector<8x32xf32>
    %327 = arith.mulf %320, %326 : vector<8x32xf32>
    %c7_i32_70 = arith.constant 7 : i32
    %c8_i32_71 = arith.constant 8 : i32
    %328 = arith.muli %c7_i32_70, %c8_i32_71 : i32
    %329 = tpu.assume_multiple %328, 8 : i32
    %c7_i32_72 = arith.constant 7 : i32
    %330 = arith.subi %c7_i32_72, %c7_i32_70 : i32
    %c8_i32_73 = arith.constant 8 : i32
    %331 = arith.muli %330, %c8_i32_73 : i32
    %332 = tpu.assume_multiple %331, 8 : i32
    %333 = arith.index_cast %329 : i32 to index
    %c0_74 = arith.constant 0 : index
    %334 = vector.load %arg10[%333, %c0_74] : memref<64x256xf32, #tpu.memory_space<vmem>>, vector<8x128xf32>
    %335 = arith.index_cast %332 : i32 to index
    %c128_75 = arith.constant 128 : index
    %336 = vector.load %arg10[%335, %c128_75] : memref<64x256xf32, #tpu.memory_space<vmem>>, vector<8x128xf32>
    %337 = arith.truncf %309 : vector<8x32xf32> to vector<8x32xbf16>
    %cst_76 = arith.constant dense<0.000000e+00> : vector<8x128xf32>
    %338 = tpu.matmul %337, %10, %cst_76 {dimension_numbers = #tpu.dot_dimension_numbers<[1], [0], [0], [1], [0, 0, 1, 1], [], []>} : vector<8x32xbf16>, vector<32x128xbf16>, vector<8x128xf32> -> vector<8x128xf32>
    %339 = arith.addf %334, %338 : vector<8x128xf32>
    %340 = arith.negf %339 : vector<8x128xf32>
    %341 = math.exp %340 : vector<8x128xf32>
    %cst_77 = arith.constant 1.000000e+00 : f32
    %342 = vector.broadcast %cst_77 : f32 to vector<8x128xf32>
    %343 = arith.addf %342, %341 : vector<8x128xf32>
    %344 = arith.divf %342, %343 : vector<8x128xf32>
    %345 = vector.extract_strided_slice %344 {offsets = [0, 0], sizes = [8, 32], strides = [1, 1]} : vector<8x128xf32> to vector<8x32xf32>
    %346 = vector.extract_strided_slice %344 {offsets = [0, 32], sizes = [8, 32], strides = [1, 1]} : vector<8x128xf32> to vector<8x32xf32>
    %347 = vector.extract_strided_slice %344 {offsets = [0, 96], sizes = [8, 32], strides = [1, 1]} : vector<8x128xf32> to vector<8x32xf32>
    %348 = vector.extract_strided_slice %339 {offsets = [0, 64], sizes = [8, 32], strides = [1, 1]} : vector<8x128xf32> to vector<8x32xf32>
    %349 = math.tanh %348 : vector<8x32xf32>
    %350 = arith.mulf %346, %307 : vector<8x32xf32>
    %351 = arith.mulf %345, %349 : vector<8x32xf32>
    %352 = arith.addf %350, %351 : vector<8x32xf32>
    %353 = math.tanh %352 : vector<8x32xf32>
    %354 = arith.mulf %347, %353 : vector<8x32xf32>
    %355 = arith.truncf %327 : vector<8x32xf32> to vector<8x32xbf16>
    %cst_78 = arith.constant dense<0.000000e+00> : vector<8x128xf32>
    %356 = tpu.matmul %355, %11, %cst_78 {dimension_numbers = #tpu.dot_dimension_numbers<[1], [0], [0], [1], [0, 0, 1, 1], [], []>} : vector<8x32xbf16>, vector<32x128xbf16>, vector<8x128xf32> -> vector<8x128xf32>
    %357 = arith.addf %336, %356 : vector<8x128xf32>
    %358 = arith.negf %357 : vector<8x128xf32>
    %359 = math.exp %358 : vector<8x128xf32>
    %cst_79 = arith.constant 1.000000e+00 : f32
    %360 = vector.broadcast %cst_79 : f32 to vector<8x128xf32>
    %361 = arith.addf %360, %359 : vector<8x128xf32>
    %362 = arith.divf %360, %361 : vector<8x128xf32>
    %363 = vector.extract_strided_slice %362 {offsets = [0, 0], sizes = [8, 32], strides = [1, 1]} : vector<8x128xf32> to vector<8x32xf32>
    %364 = vector.extract_strided_slice %362 {offsets = [0, 32], sizes = [8, 32], strides = [1, 1]} : vector<8x128xf32> to vector<8x32xf32>
    %365 = vector.extract_strided_slice %362 {offsets = [0, 96], sizes = [8, 32], strides = [1, 1]} : vector<8x128xf32> to vector<8x32xf32>
    %366 = vector.extract_strided_slice %357 {offsets = [0, 64], sizes = [8, 32], strides = [1, 1]} : vector<8x128xf32> to vector<8x32xf32>
    %367 = math.tanh %366 : vector<8x32xf32>
    %368 = arith.mulf %364, %325 : vector<8x32xf32>
    %369 = arith.mulf %363, %367 : vector<8x32xf32>
    %370 = arith.addf %368, %369 : vector<8x32xf32>
    %371 = math.tanh %370 : vector<8x32xf32>
    %372 = arith.mulf %365, %371 : vector<8x32xf32>
    %c8_i32_80 = arith.constant 8 : i32
    %373 = arith.truncf %354 : vector<8x32xf32> to vector<8x32xbf16>
    %c0_81 = arith.constant 0 : index
    %c0_82 = arith.constant 0 : index
    %374 = vector.load %arg4[%c0_81, %c0_82] : memref<32x32xbf16, #tpu.memory_space<vmem>>, vector<32x32xbf16>
    %cst_83 = arith.constant dense<0.000000e+00> : vector<8x32xf32>
    %375 = tpu.matmul %373, %374, %cst_83 {dimension_numbers = #tpu.dot_dimension_numbers<[1], [0], [0], [1], [0, 0, 1, 1], [], []>} : vector<8x32xbf16>, vector<32x32xbf16>, vector<8x32xf32> -> vector<8x32xf32>
    %376 = arith.truncf %372 : vector<8x32xf32> to vector<8x32xbf16>
    %c0_84 = arith.constant 0 : index
    %c0_85 = arith.constant 0 : index
    %377 = vector.load %arg5[%c0_84, %c0_85] : memref<32x32xbf16, #tpu.memory_space<vmem>>, vector<32x32xbf16>
    %cst_86 = arith.constant dense<0.000000e+00> : vector<8x32xf32>
    %378 = tpu.matmul %376, %377, %cst_86 {dimension_numbers = #tpu.dot_dimension_numbers<[1], [0], [0], [1], [0, 0, 1, 1], [], []>} : vector<8x32xbf16>, vector<32x32xbf16>, vector<8x32xf32> -> vector<8x32xf32>
    %379 = arith.addf %375, %378 : vector<8x32xf32>
    %c0_87 = arith.constant 0 : index
    %c0_88 = arith.constant 0 : index
    %380 = vector.load %arg6[%c0_87, %c0_88] : memref<1x32xf32, #tpu.memory_space<vmem>>, vector<1x32xf32>
    %381 = vector.broadcast %380 : vector<1x32xf32> to vector<8x32xf32>
    %382 = arith.addf %379, %381 : vector<8x32xf32>
    %cst_89 = arith.constant 0.000000e+00 : f32
    %383 = vector.broadcast %cst_89 : f32 to vector<8x32xf32>
    %384 = arith.maximumf %382, %383 : vector<8x32xf32>
    %385 = arith.truncf %384 : vector<8x32xf32> to vector<8x32xbf16>
    %c0_90 = arith.constant 0 : index
    %c0_91 = arith.constant 0 : index
    %386 = vector.load %arg7[%c0_90, %c0_91] : memref<32x128xbf16, #tpu.memory_space<vmem>>, vector<32x128xbf16>
    %cst_92 = arith.constant dense<0.000000e+00> : vector<8x128xf32>
    %387 = tpu.matmul %385, %386, %cst_92 {dimension_numbers = #tpu.dot_dimension_numbers<[1], [0], [0], [1], [0, 0, 1, 1], [], []>} : vector<8x32xbf16>, vector<32x128xbf16>, vector<8x128xf32> -> vector<8x128xf32>
    %c0_93 = arith.constant 0 : index
    %c0_94 = arith.constant 0 : index
    %388 = vector.load %arg8[%c0_93, %c0_94] : memref<1x128xf32, #tpu.memory_space<vmem>>, vector<1x128xf32>
    %389 = vector.broadcast %388 : vector<1x128xf32> to vector<8x128xf32>
    %390 = arith.addf %387, %389 : vector<8x128xf32>
    %c0_95 = arith.constant 0 : index
    %c0_96 = arith.constant 0 : index
    %391 = vector.load %arg9[%c0_95, %c0_96] : memref<8x128xf32, #tpu.memory_space<vmem>>, vector<8x128xf32>
    tpu.vector_store %arg9[%c0_95, %c0_96], %390 {strides = array<i32>} : memref<8x128xf32, #tpu.memory_space<vmem>>, vector<8x128xf32>,
    return
  }
}

</mosaic_0001>

<bundles_post_ra>
// kernel: lstm_model_forward.1
= control target key start
LH: loop header
LB: loop body
LE: loop exit
PB: predicated region body
PF: predicated region fallthrough
CT: control target
= control target key end

     0   :  { %14 = vsyncpa [#allocation4], 0  ;;  %s2656_s0 = inlined_call_operand.vmem [shape: s32[64,1], index: 0, kind: input, shape index: {}]   ;;  %s2657_s1 = inlined_call_operand.vmem [shape: bf16[64,256], index: 1, kind: input, shape index: {}]   ;;  %s2658_s2 = inlined_call_operand.vmem [shape: bf16[32,128], index: 2, kind: input, shape index: {}]   ;;  %s2659_s3 = inlined_call_operand.vmem [shape: bf16[32,128], index: 3, kind: input, shape index: {}]   ;;  %s2660_s4 = inlined_call_operand.hbm [shape: bf16[32,32], index: 4, kind: input, shape index: {}]   ;;  %s2661_s5 = inlined_call_operand.hbm [shape: bf16[32,32], index: 5, kind: input, shape index: {}]   ;;  %s2662_s6 = inlined_call_operand.vmem [shape: f32[1,32], index: 6, kind: input, shape index: {}]   ;;  %s2663_s7 = inlined_call_operand.vmem [shape: bf16[32,128], index: 7, kind: input, shape index: {}]   ;;  %s2664_s8 = inlined_call_operand.vmem [shape: f32[1,128], index: 8, kind: input, shape index: {}]   ;;  %s2665_s9 = inlined_call_operand.vmem [shape: f32[8,128], index: 9, kind: output, shape index: {}]  }
   0x1   :  { %15 = vsyncpa [#allocation6], 0  ;;  %s2186_s30 = smov [#allocation3]   ;;  %s2138_s13 = scalar_lea.hbm %s2660_s4, 256 }
   0x2   :  { %s29_s10 = sshll.u32 %s2186_s30, 4  ;;  %p2139_p0 = scmp.ne.s32.totalorder %s2660_s4, %s2138_s13  ;;  %s30_s10 = int_to_ptr.vmem [resolvable:$true] %s29_s10 }
   0x3   :  { %p2142_p1 = scmp.lt.u32.totalorder %s2138_s13, %s2660_s4 }
   0x5   :  { %p2144_p2 = pnand %p2142_p1, %p2139_p0 }
   0x7   :  { %2147 = shalt.err (!%p2144_p2)
}
   0x8   :  { %s2148_s18 = scalar_lea.vmem %s30_s10, 256  ;;  %p2153_p4 = scmp.lt.s32.totalorder %s30_s10, %s30_s10 }
   0x9   :  { %p2149_p3 = scmp.ne.s32.totalorder %s30_s10, %s2148_s18  ;;  %p2154_p5 = scmp.lt.s32.totalorder %s2148_s18, %s2148_s18 }
   0xb   :  { %p2155_p6 = por %p2154_p5, %p2153_p4 }
   0xd   :  { %p2156_p7 = pnand %p2155_p6, %p2149_p3 }
   0xf   :  { %2159 = shalt.err (!%p2156_p7)
}
  0x10   :  { %s2187_s19 = smov 64   ;;  %s2188_s20 = smov 4  }
  0x11   :  { %35 = dma.hbm_to_vmem [thread:$0]  %s2660_s4, 256, %s30_s10, [#allocation4], %s2187_s19, %s2187_s19, %s2188_s20  }
  0x12   :  { %s2189_s23 = smov [#allocation5]   ;;  %s2160_s27 = scalar_lea.hbm %s2661_s5, 256 }
  0x13   :  { %s41_s24 = sshll.u32 %s2189_s23, 4  ;;  %p2161_p8 = scmp.ne.s32.totalorder %s2661_s5, %s2160_s27  ;;  %s42_s24 = int_to_ptr.vmem [resolvable:$true] %s41_s24 }
  0x14   :  { %p2164_p9 = scmp.lt.u32.totalorder %s2160_s27, %s2661_s5 }
  0x16   :  { %p2166_p10 = pnand %p2164_p9, %p2161_p8 }
  0x18   :  { %2169 = shalt.err (!%p2166_p10)
}
  0x19   :  { %s2170_s12 = scalar_lea.vmem %s42_s24, 256  ;;  %p2175_p12 = scmp.lt.s32.totalorder %s42_s24, %s42_s24 }
  0x1a   :  { %p2171_p11 = scmp.ne.s32.totalorder %s42_s24, %s2170_s12  ;;  %p2176_p13 = scmp.lt.s32.totalorder %s2170_s12, %s2170_s12 }
  0x1c   :  { %p2177_p0 = por %p2176_p13, %p2175_p12 }
  0x1e   :  { %p2178_p1 = pnand %p2177_p0, %p2171_p11 }
  0x20   :  { %2181 = shalt.err (!%p2178_p1)
}
  0x21   :  { %47 = dma.hbm_to_vmem [thread:$0]  %s2661_s5, 256, %s42_s24, [#allocation6], %s2187_s19, %s2187_s19, %s2188_s20  }
  0x22   :  { %2182 = dma.done.wait [#allocation4], 256  }
  0x23   :  { %2183 = vsyncadd [#allocation4], 4294967040 }
  0x24   :  { %2184 = dma.done.wait [#allocation6], 256  }
  0x25   :  { %2185 = vsyncadd [#allocation6], 4294967040  ;;  %v2190_v0 = vmov 0   ;;  %v2191_v1 = vmov 0.0   ;;  %v63_v2 = vld [vmem:[%s2656_s0 + $0x10] sm:$0xff]  ;;  %v61_v3 = vld [vmem:[%s2656_s0] sm:$0xff]  ;;  %v69_v22 = vlaneseq }
  0x26   :  { %1986 = vset.pattern.permute.xlu1 %v2190_v0  ;;  %1985 = vset.pattern.permute.xlu0 %v2190_v0  ;;  %v64_v4 = vld [vmem:[%s2656_s0 + $0x18] sm:$0xff]  ;;  %v62_v5 = vld [vmem:[%s2656_s0 + $0x8] sm:$0xff]  ;;  %v65_v10 = vld [vmem:[%s2656_s0 + $0x20] sm:$0xff]  ;;  %vm2192_vm0 = vmmov 0   ;;  %vm171_vm3 = vcmask 523264   ;;  %vm301_vm10 = vcmask 261120  }
  0x27   :  { %1825 = vmatprep.subr.bf16.mxu1 %v2191_v1  ;;  %216 = vmatprep.mubr.bf16.mxu0 %v2190_v0  ;;  %v1987_v6 = vld [vmem:[%s2657_s1 + $0x4] ss:$8 sps:$4 sm:$0xff]   ;;  %v1989_v7 = vld [vmem:[%s2657_s1] ss:$8 sps:$4 sm:$0xff]   ;;  %v1990_v8 = vld [vmem:[%s2657_s1 + $0x14] ss:$8 sps:$4 sm:$0xff]  }
  0x28   :  { %78 = vperm.xlu1 %1986, %v63_v2   ;;  %72 = vperm.xlu0 %1985, %v61_v3   ;;  %v66_v9 = vld [vmem:[%s2656_s0 + $0x28] sm:$0xff]  ;;  %v1992_v11 = vld [vmem:[%s2657_s1 + $0x10] ss:$8 sps:$4 sm:$0xff]   ;;  %v2309_v12 = vld [vmem:[%s2658_s2] sm:$0xff]   ;;  %v70_v23 = vand.u32 127, %v69_v22 }
  0x29   :  { %184 = vmatprep.subr.bf16.mxu0 %v1987_v6  ;;  %v68_v13 = vld [vmem:[%s2656_s0 + $0x38] sm:$0xff]  ;;  %v67_v14 = vld [vmem:[%s2656_s0 + $0x30] sm:$0xff]  ;;  %v1993_v15 = vld [vmem:[%s2657_s1 + $0x24] ss:$8 sps:$4 sm:$0xff]   ;;  %1829 = vmatprep.mubr.msk.bf16.mxu1 %vm2192_vm0, %v2191_v1 }
  0x2a   :  { %185 = vmatpush1.bf16.msra.mxu0 %v1989_v7  ;;  %v1995_v16 = vld [vmem:[%s2657_s1 + $0x20] ss:$8 sps:$4 sm:$0xff]   ;;  %1826 = vmatpush3.bf16.msra.mxu1 %v2309_v12  ;;  %v1997_v18 = vld [vmem:[%s2657_s1 + $0x34] ss:$8 sps:$4 sm:$0xff]   ;;  %v1999_v19 = vld [vmem:[%s2657_s1 + $0x30] ss:$8 sps:$4 sm:$0xff]  }
  0x2b   :  { %186 = vmatprep.subr.bf16.mxu0 %v1990_v8  ;;  %v2328_v17 = vld [vmem:[%s2658_s2 + $0x8] sm:$0xff]   ;;  %1827 = vmatprep.subr.bf16.mxu1 %v2191_v1  ;;  %v2347_v20 = vld [vmem:[%s2659_s3] sm:$0xff]  }
  0x2c   :  { %81 = vperm.xlu1 %1986, %v64_v4   ;;  %75 = vperm.xlu0 %1985, %v62_v5   ;;  %v2353_v21 = vld [vmem:[%s2659_s3 + $0x8] sm:$0xff]   ;;  %s2193_s3 = smov 32  }
  0x2e   :  { %187 = vmatpush1.bf16.msra.mxu0 %v1992_v11  ;;  %1828 = vmatpush3.bf16.msra.mxu1 %v2328_v17 }
  0x2f   :  { %188 = vmatprep.subr.bf16.mxu0 %v1993_v15  ;;  %1833 = vmatprep.subr.bf16.mxu1 %v2191_v1 }
  0x30   :  { %87 = vperm.xlu1 %1986, %v66_v9   ;;  %84 = vperm.xlu0 %1985, %v65_v10  }
  0x31   :  { %1830 = vmatmul.mubr.bf16.vlgmr.msra.gmra.mrb[0].mxu1 %v2190_v0 }
  0x32   :  { %189 = vmatpush1.bf16.msra.mxu0 %v1995_v16  ;;  %1837 = vmatprep.mubr.msk.bf16.mxu1 %vm2192_vm0, %v2191_v1 }
  0x33   :  { %190 = vmatprep.subr.bf16.mxu0 %v1997_v18  ;;  %1834 = vmatpush3.bf16.msra.mxu1 %v2347_v20 }
  0x34   :  { %93 = vperm.xlu1 %1986, %v68_v13   ;;  %90 = vperm.xlu0 %1985, %v67_v14  }
  0x35   :  { %1835 = vmatprep.subr.bf16.mxu1 %v2191_v1 }
  0x36   :  { %191 = vmatpush1.bf16.msra.mxu0 %v1999_v19 }
  0x37   :  { %1865 = vmatprep.subr.bf16.mxu0 %v2191_v1  ;;  %1836 = vmatpush3.bf16.msra.mxu1 %v2353_v21 }
  0x38   :  { %1841 = vmatprep.subr.bf16.mxu1 %v2191_v1 }
  0x3a   :  { %1838 = vmatmul.mubr.bf16.vlgmr.msra.gmra.mrb[4].mxu1 %v2190_v0 }
  0x3b   :  { %1842 = vmatpush3.bf16.msra.mxu1 %v2309_v12  ;;  %1845 = vmatprep.mubr.msk.bf16.mxu1 %vm2192_vm0, %v2191_v1 }
  0x3c   :  { %1843 = vmatprep.subr.bf16.mxu1 %v2191_v1 }
  0x3f   :  { %1844 = vmatpush3.bf16.msra.mxu1 %v2328_v17 }
  0x40   :  { %1849 = vmatprep.subr.bf16.mxu1 %v2191_v1 }
  0xa7   :  { %v73_v24 = vpop.permute.xlu0 %72  ;;  %v79_v25 = vpop.permute.xlu1 %78 }
  0xa8   :  { %vm95_vm1 = vcmp.eq.s32.totalorder %v73_v24, %v70_v23  ;;  %vm97_vm4 = vcmp.eq.s32.totalorder %v79_v25, %v70_v23 }
  0xa9   :  { %v1703_v27 = vsel %vm95_vm1, 1.0, %v2191_v1  ;;  %v1705_v31 = vsel %vm97_vm4, 1.0, %v2191_v1 }
  0xab   :  { %v76_v26 = vpop.permute.xlu0 %75  ;;  %v82_v30 = vpop.permute.xlu1 %81 }
  0xac   :  { %vm96_vm2 = vcmp.eq.s32.totalorder %v76_v26, %v70_v23  ;;  %vm98_vm5 = vcmp.eq.s32.totalorder %v82_v30, %v70_v23 }
  0xad   :  { %v1704_v28 = vsel %vm96_vm2, 1.0, %v2191_v1  ;;  %v1706_v32 = vsel %vm98_vm5, 1.0, %v2191_v1 }
  0xae   :  { %v119_v29 = vpack.c.bf16 %v1704_v28, %v1703_v27  ;;  %v120_v35 = vpack.c.bf16 %v1706_v32, %v1705_v31 }
  0xaf   :  { %v88_v33 = vpop.permute.xlu1 %87  ;;  %v85_v34 = vpop.permute.xlu0 %84 }
  0xb0   :  { %1719 = vmatmul.mubr.msk.bf16.vlgmr.msra.gmra.mrb[0].mxu0 %vm171_vm3, %v119_v29  ;;  %vm100_vm6 = vcmp.eq.s32.totalorder %v88_v33, %v70_v23  ;;  %vm99_vm7 = vcmp.eq.s32.totalorder %v85_v34, %v70_v23 }
  0xb1   :  { %226 = vmatprep.mubr.bf16.mxu0 %v2190_v0  ;;  %1866 = vmatpush3.bf16.msra.mxu0 %v2347_v20  ;;  %v1708_v36 = vsel %vm100_vm6, 1.0, %v2191_v1  ;;  %v1707_v37 = vsel %vm99_vm7, 1.0, %v2191_v1 }
  0xb2   :  { %1867 = vmatprep.subr.bf16.mxu0 %v2191_v1  ;;  %v121_v40 = vpack.c.bf16 %v1708_v36, %v1707_v37 }
  0xb3   :  { %v94_v38 = vpop.permute.xlu1 %93  ;;  %v91_v39 = vpop.permute.xlu0 %90 }
  0xb4   :  { %vm102_vm8 = vcmp.eq.s32.totalorder %v94_v38, %v70_v23  ;;  %vm101_vm9 = vcmp.eq.s32.totalorder %v91_v39, %v70_v23 }
  0xb5   :  { %1868 = vmatpush3.bf16.msra.mxu0 %v2353_v21  ;;  %v1710_v41 = vsel %vm102_vm8, 1.0, %v2191_v1  ;;  %v1709_v42 = vsel %vm101_vm9, 1.0, %v2191_v1 }
  0xb6   :  { %1881 = vmatprep.subr.bf16.mxu0 %v2191_v1  ;;  %v122_v43 = vpack.c.bf16 %v1710_v41, %v1709_v42 }
  0xb8   :  { %1720 = vmatmul.mubr.msk.bf16.gmra.mrb[4].mxu0 %vm171_vm3, %v120_v35 }
  0xb9   :  { %236 = vmatprep.mubr.bf16.mxu0 %v2190_v0 }
  0xc0   :  { %1721 = vmatmul.mubr.msk.bf16.gmra.mrb[8].mxu0 %vm171_vm3, %v121_v40 }
  0xc1   :  { %246 = vmatprep.mubr.bf16.mxu0 %v2190_v0 }
  0xc8   :  { %1722 = vmatmul.mubr.msk.bf16.gmra.mrb[12].mxu0 %vm171_vm3, %v122_v43 }
  0xc9   :  { %1869 = vmatprep.mubr.msk.bf16.mxu0 %vm2192_vm0, %v2191_v1 }
 0x104   :  { %v339_v44 = vpop.f32.mrb[0].mxu1 }
 0x105   :  { %v1831_v45 = vpop.f32.mrb[1].mxu1 }
 0x106   :  { %v342_v46 = vpop.f32.mrb[2].mxu1 }
 0x107   :  { %v1832_v47 = vpop.f32.mrb[3].mxu1 }
 0x10d   :  { %v416_v48 = vpop.f32.mrb[4].mxu1 }
 0x10e   :  { %v1839_v49 = vpop.f32.mrb[5].mxu1 }
 0x10f   :  { %v419_v50 = vpop.f32.mrb[6].mxu1 }
 0x110   :  { %v1840_v51 = vpop.f32.mrb[7].mxu1 }
 0x183   :  { %v218_v52 = vpop.f32.mrb[0].mxu0 }
 0x184   :  { %v345_v53 = vadd.f32 %v339_v44, %v218_v52  ;;  %v2386_v54 = vpop.f32.mrb[1].mxu0 }
 0x185   :  { %v2388_v55 = vpop.f32.mrb[2].mxu0 }
 0x186   :  { %2009 = vtanh.f32 %v345_v53  ;;  %v2390_v56 = vpop.f32.mrb[3].mxu0  ;;  %v1725_v9 = vmul.f32 -1.442695, %v345_v53 }
 0x18b   :  { %v2392_v57 = vpop.f32.mrb[4].mxu0 }
 0x18c   :  { %v2394_v58 = vpop.f32.mrb[5].mxu0 }
 0x18d   :  { %v2396_v59 = vpop.f32.mrb[6].mxu0 }
 0x18e   :  { %v2398_v60 = vpop.f32.mrb[7].mxu0 }
 0x190   :  { %v2010_v61 = vpop.eup %2009 }
 0x191   :  { %355 = vrot.lane.b32.xlu0 %v2010_v61, %s2187_s19 }
 0x193   :  { %v2401_v62 = vpop.f32.mrb[8].mxu0 }
 0x194   :  { %v2403_v63 = vpop.f32.mrb[9].mxu0 }
 0x195   :  { %v2405_v0 = vpop.f32.mrb[10].mxu0 }
 0x196   :  { %v2407_v2 = vpop.f32.mrb[11].mxu0 }
 0x19b   :  { %v2409_v3 = vpop.f32.mrb[12].mxu0 }
 0x19c   :  { %v2411_v4 = vpop.f32.mrb[13].mxu0 }
 0x19d   :  { %v2413_v5 = vpop.f32.mrb[14].mxu0 }
 0x19e   :  { %v254_v6 = vpop.f32.mrb[15].mxu0 }
 0x19f   :  { %v422_v7 = vadd.f32 %v416_v48, %v254_v6 }
 0x1a1   :  { %2011 = vtanh.f32 %v422_v7  ;;  %v1728_v13 = vmul.f32 -1.442695, %v422_v7 }
 0x1a2   :  { %2013 = vpow2.f32 %v1725_v9 }
 0x1ab   :  { %v2012_v8 = vpop.eup %2011 }
 0x1ac   :  { %432 = vrot.lane.b32.xlu1 %v2012_v8, %s2187_s19  ;;  %v2014_v10 = vpop.eup %2013 }
 0x1ad   :  { %v349_v11 = vadd.f32 1.0, %v2014_v10 }
 0x1af   :  { %2015 = vrcp.f32 %v349_v11 }
 0x1b0   :  { %2017 = vpow2.f32 %v1728_v13 }
 0x1b9   :  { %v2016_v14 = vpop.eup %2015 }
 0x1ba   :  { %v2018_v18 = vpop.eup %2017  ;;  %v353_v25 = vmul.f32 0.0, %v2016_v14 }
 0x1bb   :  { %v426_v19 = vadd.f32 1.0, %v2018_v18 }
 0x1bd   :  { %2019 = vrcp.f32 %v426_v19 }
 0x1c7   :  { %v2020_v22 = vpop.eup %2019 }
 0x1c8   :  { %v430_v29 = vmul.f32 0.0, %v2020_v22 }
 0x203   :  { %v356_v15 = vpop.permute.xlu0 %355 }
 0x204   :  { %v358_v16 = vmul.f32 %v2016_v14, %v356_v15 }
 0x206   :  { %360 = vrot.lane.b32.xlu0 %v358_v16, %s2193_s3 }
 0x21e   :  { %v433_v23 = vpop.permute.xlu1 %432 }
 0x21f   :  { %v435_v24 = vmul.f32 %v2020_v22, %v433_v23 }
 0x221   :  { %437 = vrot.lane.b32.xlu1 %v435_v24, %s2193_s3 }
 0x278   :  { %v361_v26 = vpop.permute.xlu0 %360 }
 0x279   :  { %v2418_v27 = vadd.f32 %v361_v26, %v353_v25 }
 0x27b   :  { %2021 = vtanh.f32 %v2418_v27 }
 0x285   :  { %v2022_v28 = vpop.eup %2021 }
 0x286   :  { %366 = vrot.lane.b32.xlu0 %v2022_v28, %s2187_s19 }
 0x293   :  { %v438_v30 = vpop.permute.xlu1 %437 }
 0x294   :  { %v2422_v31 = vadd.f32 %v438_v30, %v430_v29 }
 0x296   :  { %2023 = vtanh.f32 %v2422_v31 }
 0x2a0   :  { %v2024_v32 = vpop.eup %2023 }
 0x2a1   :  { %443 = vrot.lane.b32.xlu1 %v2024_v32, %s2187_s19 }
 0x2f8   :  { %v367_v33 = vpop.permute.xlu0 %366 }
 0x2f9   :  { %v369_v34 = vmul.f32 %v2016_v14, %v367_v33 }
 0x2fb   :  { %v455_v35 = vpack.c.bf16 %v369_v34, %v369_v34 }
 0x2fd   :  { %457 = vrot.lane.b32.xlu0 %v455_v35, %s2193_s3 }
 0x313   :  { %v444_v36 = vpop.permute.xlu1 %443 }
 0x314   :  { %v446_v37 = vmul.f32 %v2020_v22, %v444_v36 }
 0x316   :  { %v527_v38 = vpack.c.bf16 %v446_v37, %v446_v37 }
 0x318   :  { %529 = vrot.lane.b32.xlu1 %v527_v38, %s2193_s3 }
 0x36f   :  { %v458_v39 = vpop.permute.xlu0 %457 }
 0x370   :  { %1846 = vmatmul.mubr.msk.bf16.vlgmr.msra.gmra.mrb[8].mxu1 %vm301_vm10, %v458_v39 }
 0x371   :  { %1850 = vmatpush3.bf16.msra.mxu1 %v2347_v20  ;;  %1853 = vmatprep.mubr.msk.bf16.mxu1 %vm2192_vm0, %v2191_v1 }
 0x372   :  { %1851 = vmatprep.subr.bf16.mxu1 %v2191_v1 }
 0x375   :  { %1852 = vmatpush3.bf16.msra.mxu1 %v2353_v21 }
 0x376   :  { %1857 = vmatprep.subr.bf16.mxu1 %v2191_v1 }
 0x38a   :  { %v530_v40 = vpop.permute.xlu1 %529 }
 0x38b   :  { %1854 = vmatmul.mubr.msk.bf16.vlgmr.msra.gmra.mrb[12].mxu1 %vm301_vm10, %v530_v40 }
 0x38c   :  { %1858 = vmatpush3.bf16.msra.mxu1 %v2309_v12  ;;  %1861 = vmatprep.mubr.msk.bf16.mxu1 %vm2192_vm0, %v2191_v1 }
 0x38d   :  { %1859 = vmatprep.subr.bf16.mxu1 %v2191_v1 }
 0x390   :  { %1860 = vmatpush3.bf16.msra.mxu1 %v2328_v17 }
 0x391   :  { %1873 = vmatprep.subr.bf16.mxu1 %v2191_v1 }
 0x443   :  { %v496_v41 = vpop.f32.mrb[8].mxu1 }
 0x444   :  { %v502_v42 = vadd.f32 %v496_v41, %v2388_v55  ;;  %v1847_v43 = vpop.f32.mrb[9].mxu1 }
 0x445   :  { %v499_v44 = vpop.f32.mrb[10].mxu1 }
 0x446   :  { %2025 = vtanh.f32 %v502_v42  ;;  %v1848_v45 = vpop.f32.mrb[11].mxu1  ;;  %v1730_v53 = vmul.f32 -1.442695, %v502_v42 }
 0x450   :  { %v2026_v46 = vpop.eup %2025 }
 0x451   :  { %512 = vrot.lane.b32.xlu0 %v2026_v46, %s2187_s19 }
 0x45e   :  { %v568_v47 = vpop.f32.mrb[12].mxu1 }
 0x45f   :  { %v574_v48 = vadd.f32 %v568_v47, %v2411_v4  ;;  %v1855_v49 = vpop.f32.mrb[13].mxu1 }
 0x460   :  { %v571_v50 = vpop.f32.mrb[14].mxu1 }
 0x461   :  { %2027 = vtanh.f32 %v574_v48  ;;  %v1856_v51 = vpop.f32.mrb[15].mxu1  ;;  %v1732_v6 = vmul.f32 -1.442695, %v574_v48 }
 0x462   :  { %2029 = vpow2.f32 %v1730_v53 }
 0x46b   :  { %v2028_v52 = vpop.eup %2027 }
 0x46c   :  { %584 = vrot.lane.b32.xlu1 %v2028_v52, %s2187_s19  ;;  %v2030_v55 = vpop.eup %2029 }
 0x46d   :  { %v506_v61 = vadd.f32 1.0, %v2030_v55 }
 0x46f   :  { %2031 = vrcp.f32 %v506_v61 }
 0x470   :  { %2033 = vpow2.f32 %v1732_v6 }
 0x479   :  { %v2032_v7 = vpop.eup %2031 }
 0x47a   :  { %v2034_v4 = vpop.eup %2033  ;;  %v510_v15 = vmul.f32 %v2032_v7, %v2418_v27 }
 0x47b   :  { %v578_v10 = vadd.f32 1.0, %v2034_v4 }
 0x47d   :  { %2035 = vrcp.f32 %v578_v10 }
 0x487   :  { %v2036_v11 = vpop.eup %2035 }
 0x488   :  { %v582_v22 = vmul.f32 %v2036_v11, %v2422_v31 }
 0x4c3   :  { %v513_v8 = vpop.permute.xlu0 %512 }
 0x4c4   :  { %v515_v9 = vmul.f32 %v2032_v7, %v513_v8 }
 0x4c6   :  { %517 = vrot.lane.b32.xlu0 %v515_v9, %s2193_s3 }
 0x4de   :  { %v585_v13 = vpop.permute.xlu1 %584 }
 0x4df   :  { %v587_v14 = vmul.f32 %v2036_v11, %v585_v13 }
 0x4e1   :  { %589 = vrot.lane.b32.xlu1 %v587_v14, %s2193_s3 }
 0x538   :  { %v518_v16 = vpop.permute.xlu0 %517 }
 0x539   :  { %v2449_v18 = vadd.f32 %v518_v16, %v510_v15 }
 0x53b   :  { %2037 = vtanh.f32 %v2449_v18 }
 0x545   :  { %v2038_v19 = vpop.eup %2037 }
 0x546   :  { %523 = vrot.lane.b32.xlu0 %v2038_v19, %s2187_s19 }
 0x553   :  { %v590_v23 = vpop.permute.xlu1 %589 }
 0x554   :  { %v2454_v24 = vadd.f32 %v590_v23, %v582_v22 }
 0x556   :  { %2039 = vtanh.f32 %v2454_v24 }
 0x560   :  { %v2040_v25 = vpop.eup %2039 }
 0x561   :  { %595 = vrot.lane.b32.xlu1 %v2040_v25, %s2187_s19 }
 0x5b8   :  { %v524_v26 = vpop.permute.xlu0 %523 }
 0x5b9   :  { %v526_v27 = vmul.f32 %v2032_v7, %v524_v26 }
 0x5bb   :  { %v607_v28 = vpack.c.bf16 %v526_v27, %v526_v27 }
 0x5bd   :  { %609 = vrot.lane.b32.xlu0 %v607_v28, %s2193_s3 }
 0x5d3   :  { %v596_v29 = vpop.permute.xlu1 %595 }
 0x5d4   :  { %v598_v30 = vmul.f32 %v2036_v11, %v596_v29 }
 0x5d6   :  { %v679_v32 = vpack.c.bf16 %v598_v30, %v598_v30 }
 0x5d8   :  { %681 = vrot.lane.b32.xlu1 %v679_v32, %s2193_s3 }
 0x62f   :  { %v610_v33 = vpop.permute.xlu0 %609 }
 0x630   :  { %1862 = vmatmul.mubr.msk.bf16.vlgmr.msra.gmra.mrb[16].mxu1 %vm301_vm10, %v610_v33 }
 0x631   :  { %1874 = vmatpush3.bf16.msra.mxu1 %v2309_v12  ;;  %1877 = vmatprep.mubr.msk.bf16.mxu1 %vm2192_vm0, %v2191_v1 }
 0x632   :  { %1875 = vmatprep.subr.bf16.mxu1 %v2191_v1 }
 0x635   :  { %1876 = vmatpush3.bf16.msra.mxu1 %v2328_v17 }
 0x636   :  { %1889 = vmatprep.subr.bf16.mxu1 %v2191_v1 }
 0x64a   :  { %v682_v31 = vpop.permute.xlu1 %681 }
 0x64b   :  { %1870 = vmatmul.mubr.msk.bf16.vlgmr.msra.gmra.mrb[16].mxu0 %vm301_vm10, %v682_v31 }
 0x64c   :  { %1882 = vmatpush3.bf16.msra.mxu0 %v2347_v20  ;;  %1885 = vmatprep.mubr.msk.bf16.mxu0 %vm2192_vm0, %v2191_v1 }
 0x64d   :  { %1883 = vmatprep.subr.bf16.mxu0 %v2191_v1 }
 0x650   :  { %1884 = vmatpush3.bf16.msra.mxu0 %v2353_v21 }
 0x651   :  { %1897 = vmatprep.subr.bf16.mxu0 %v2191_v1 }
 0x703   :  { %v648_v34 = vpop.f32.mrb[16].mxu1 }
 0x704   :  { %v654_v35 = vadd.f32 %v648_v34, %v2392_v57  ;;  %v1863_v36 = vpop.f32.mrb[17].mxu1 }
 0x705   :  { %v651_v37 = vpop.f32.mrb[18].mxu1 }
 0x706   :  { %2041 = vtanh.f32 %v654_v35  ;;  %v1864_v38 = vpop.f32.mrb[19].mxu1  ;;  %v1734_v46 = vmul.f32 -1.442695, %v654_v35 }
 0x710   :  { %v2042_v39 = vpop.eup %2041 }
 0x711   :  { %664 = vrot.lane.b32.xlu0 %v2042_v39, %s2187_s19 }
 0x71e   :  { %v720_v40 = vpop.f32.mrb[16].mxu0 }
 0x71f   :  { %v726_v41 = vadd.f32 %v720_v40, %v2407_v2  ;;  %v1871_v42 = vpop.f32.mrb[17].mxu0 }
 0x720   :  { %v723_v43 = vpop.f32.mrb[18].mxu0 }
 0x721   :  { %2043 = vtanh.f32 %v726_v41  ;;  %v1872_v44 = vpop.f32.mrb[19].mxu0  ;;  %v1736_v48 = vmul.f32 -1.442695, %v726_v41 }
 0x722   :  { %2045 = vpow2.f32 %v1734_v46 }
 0x72b   :  { %v2044_v45 = vpop.eup %2043 }
 0x72c   :  { %736 = vrot.lane.b32.xlu1 %v2044_v45, %s2187_s19  ;;  %v2046_v57 = vpop.eup %2045 }
 0x72d   :  { %v658_v47 = vadd.f32 1.0, %v2046_v57 }
 0x72f   :  { %2047 = vrcp.f32 %v658_v47 }
 0x730   :  { %2049 = vpow2.f32 %v1736_v48 }
 0x739   :  { %v2048_v49 = vpop.eup %2047 }
 0x73a   :  { %v2050_v2 = vpop.eup %2049  ;;  %v662_v6 = vmul.f32 %v2048_v49, %v2449_v18 }
 0x73b   :  { %v730_v52 = vadd.f32 1.0, %v2050_v2 }
 0x73d   :  { %2051 = vrcp.f32 %v730_v52 }
 0x747   :  { %v2052_v53 = vpop.eup %2051 }
 0x748   :  { %v734_v4 = vmul.f32 %v2052_v53, %v2454_v24 }
 0x783   :  { %v665_v50 = vpop.permute.xlu0 %664 }
 0x784   :  { %v667_v51 = vmul.f32 %v2048_v49, %v665_v50 }
 0x786   :  { %669 = vrot.lane.b32.xlu0 %v667_v51, %s2193_s3 }
 0x79e   :  { %v737_v55 = vpop.permute.xlu1 %736 }
 0x79f   :  { %v739_v61 = vmul.f32 %v2052_v53, %v737_v55 }
 0x7a1   :  { %741 = vrot.lane.b32.xlu1 %v739_v61, %s2193_s3 }
 0x7f8   :  { %v670_v7 = vpop.permute.xlu0 %669 }
 0x7f9   :  { %v2481_v8 = vadd.f32 %v670_v7, %v662_v6 }
 0x7fb   :  { %2053 = vtanh.f32 %v2481_v8 }
 0x805   :  { %v2054_v9 = vpop.eup %2053 }
 0x806   :  { %675 = vrot.lane.b32.xlu0 %v2054_v9, %s2187_s19 }
 0x813   :  { %v742_v10 = vpop.permute.xlu1 %741 }
 0x814   :  { %v2486_v11 = vadd.f32 %v742_v10, %v734_v4 }
 0x816   :  { %2055 = vtanh.f32 %v2486_v11 }
 0x820   :  { %v2056_v13 = vpop.eup %2055 }
 0x821   :  { %747 = vrot.lane.b32.xlu1 %v2056_v13, %s2187_s19 }
 0x878   :  { %v676_v14 = vpop.permute.xlu0 %675 }
 0x879   :  { %v678_v15 = vmul.f32 %v2048_v49, %v676_v14 }
 0x87b   :  { %v759_v16 = vpack.c.bf16 %v678_v15, %v678_v15 }
 0x87d   :  { %761 = vrot.lane.b32.xlu0 %v759_v16, %s2193_s3 }
 0x893   :  { %v748_v18 = vpop.permute.xlu1 %747 }
 0x894   :  { %v750_v19 = vmul.f32 %v2052_v53, %v748_v18 }
 0x896   :  { %v831_v22 = vpack.c.bf16 %v750_v19, %v750_v19 }
 0x898   :  { %833 = vrot.lane.b32.xlu1 %v831_v22, %s2193_s3 }
 0x8ef   :  { %v762_v23 = vpop.permute.xlu0 %761 }
 0x8f0   :  { %1878 = vmatmul.mubr.msk.bf16.vlgmr.msra.gmra.mrb[20].mxu1 %vm301_vm10, %v762_v23 }
 0x8f1   :  { %1890 = vmatpush3.bf16.msra.mxu1 %v2309_v12  ;;  %1893 = vmatprep.mubr.msk.bf16.mxu1 %vm2192_vm0, %v2191_v1 }
 0x8f2   :  { %1891 = vmatprep.subr.bf16.mxu1 %v2191_v1 }
 0x8f5   :  { %1892 = vmatpush3.bf16.msra.mxu1 %v2328_v17 }
 0x8f6   :  { %1905 = vmatprep.subr.bf16.mxu1 %v2191_v1 }
 0x90a   :  { %v834_v24 = vpop.permute.xlu1 %833 }
 0x90b   :  { %1886 = vmatmul.mubr.msk.bf16.vlgmr.msra.gmra.mrb[20].mxu0 %vm301_vm10, %v834_v24 }
 0x90c   :  { %1898 = vmatpush3.bf16.msra.mxu0 %v2347_v20  ;;  %1901 = vmatprep.mubr.msk.bf16.mxu0 %vm2192_vm0, %v2191_v1 }
 0x90d   :  { %1899 = vmatprep.subr.bf16.mxu0 %v2191_v1 }
 0x910   :  { %1900 = vmatpush3.bf16.msra.mxu0 %v2353_v21 }
 0x911   :  { %1913 = vmatprep.subr.bf16.mxu0 %v2191_v1 }
 0x9c3   :  { %v800_v25 = vpop.f32.mrb[20].mxu1 }
 0x9c4   :  { %v806_v26 = vadd.f32 %v800_v25, %v2396_v59  ;;  %v1879_v27 = vpop.f32.mrb[21].mxu1 }
 0x9c5   :  { %v803_v28 = vpop.f32.mrb[22].mxu1 }
 0x9c6   :  { %2057 = vtanh.f32 %v806_v26  ;;  %v1880_v29 = vpop.f32.mrb[23].mxu1  ;;  %v1738_v37 = vmul.f32 -1.442695, %v806_v26 }
 0x9d0   :  { %v2058_v30 = vpop.eup %2057 }
 0x9d1   :  { %816 = vrot.lane.b32.xlu0 %v2058_v30, %s2187_s19 }
 0x9de   :  { %v872_v32 = vpop.f32.mrb[20].mxu0 }
 0x9df   :  { %v878_v33 = vadd.f32 %v872_v32, %v2403_v63  ;;  %v1887_v31 = vpop.f32.mrb[21].mxu0 }
 0x9e0   :  { %v875_v34 = vpop.f32.mrb[22].mxu0 }
 0x9e1   :  { %2059 = vtanh.f32 %v878_v33  ;;  %v1888_v35 = vpop.f32.mrb[23].mxu0  ;;  %v1740_v39 = vmul.f32 -1.442695, %v878_v33 }
 0x9e2   :  { %2061 = vpow2.f32 %v1738_v37 }
 0x9eb   :  { %v2060_v36 = vpop.eup %2059 }
 0x9ec   :  { %888 = vrot.lane.b32.xlu1 %v2060_v36, %s2187_s19  ;;  %v2062_v59 = vpop.eup %2061 }
 0x9ed   :  { %v810_v38 = vadd.f32 1.0, %v2062_v59 }
 0x9ef   :  { %2063 = vrcp.f32 %v810_v38 }
 0x9f0   :  { %2065 = vpow2.f32 %v1740_v39 }
 0x9f9   :  { %v2064_v40 = vpop.eup %2063 }
 0x9fa   :  { %v2066_v63 = vpop.eup %2065  ;;  %v814_v57 = vmul.f32 %v2064_v40, %v2481_v8 }
 0x9fb   :  { %v882_v43 = vadd.f32 1.0, %v2066_v63 }
 0x9fd   :  { %2067 = vrcp.f32 %v882_v43 }
 0xa07   :  { %v2068_v44 = vpop.eup %2067 }
 0xa08   :  { %v886_v50 = vmul.f32 %v2068_v44, %v2486_v11 }
 0xa43   :  { %v817_v41 = vpop.permute.xlu0 %816 }
 0xa44   :  { %v819_v42 = vmul.f32 %v2064_v40, %v817_v41 }
 0xa46   :  { %821 = vrot.lane.b32.xlu0 %v819_v42, %s2193_s3 }
 0xa5e   :  { %v889_v45 = vpop.permute.xlu1 %888 }
 0xa5f   :  { %v891_v46 = vmul.f32 %v2068_v44, %v889_v45 }
 0xa61   :  { %893 = vrot.lane.b32.xlu1 %v891_v46, %s2193_s3 }
 0xab8   :  { %v822_v47 = vpop.permute.xlu0 %821 }
 0xab9   :  { %v2513_v48 = vadd.f32 %v822_v47, %v814_v57 }
 0xabb   :  { %2069 = vtanh.f32 %v2513_v48 }
 0xac5   :  { %v2070_v49 = vpop.eup %2069 }
 0xac6   :  { %827 = vrot.lane.b32.xlu0 %v2070_v49, %s2187_s19 }
 0xad3   :  { %v894_v51 = vpop.permute.xlu1 %893 }
 0xad4   :  { %v2518_v2 = vadd.f32 %v894_v51, %v886_v50 }
 0xad6   :  { %2071 = vtanh.f32 %v2518_v2 }
 0xae0   :  { %v2072_v52 = vpop.eup %2071 }
 0xae1   :  { %899 = vrot.lane.b32.xlu1 %v2072_v52, %s2187_s19 }
 0xb38   :  { %v828_v53 = vpop.permute.xlu0 %827 }
 0xb39   :  { %v830_v55 = vmul.f32 %v2064_v40, %v828_v53 }
 0xb3b   :  { %v905_v61 = vpack.c.bf16 %v830_v55, %v830_v55 }
 0xb3d   :  { %907 = vrot.lane.b32.xlu0 %v905_v61, %s2193_s3 }
 0xb53   :  { %v900_v6 = vpop.permute.xlu1 %899 }
 0xb54   :  { %v902_v7 = vmul.f32 %v2068_v44, %v900_v6 }
 0xb56   :  { %v977_v8 = vpack.c.bf16 %v902_v7, %v902_v7 }
 0xb58   :  { %979 = vrot.lane.b32.xlu1 %v977_v8, %s2193_s3 }
 0xbaf   :  { %v908_v9 = vpop.permute.xlu0 %907 }
 0xbb0   :  { %1894 = vmatmul.mubr.msk.bf16.vlgmr.msra.gmra.mrb[24].mxu1 %vm301_vm10, %v908_v9 }
 0xbb1   :  { %1906 = vmatpush3.bf16.msra.mxu1 %v2309_v12  ;;  %1909 = vmatprep.mubr.msk.bf16.mxu1 %vm2192_vm0, %v2191_v1 }
 0xbb2   :  { %1907 = vmatprep.subr.bf16.mxu1 %v2191_v1 }
 0xbb5   :  { %1908 = vmatpush3.bf16.msra.mxu1 %v2328_v17 }
 0xbb6   :  { %1921 = vmatprep.subr.bf16.mxu1 %v2191_v1 }
 0xbca   :  { %v980_v4 = vpop.permute.xlu1 %979 }
 0xbcb   :  { %1902 = vmatmul.mubr.msk.bf16.vlgmr.msra.gmra.mrb[24].mxu0 %vm301_vm10, %v980_v4 }
 0xbcc   :  { %1914 = vmatpush3.bf16.msra.mxu0 %v2347_v20  ;;  %1917 = vmatprep.mubr.msk.bf16.mxu0 %vm2192_vm0, %v2191_v1 }
 0xbcd   :  { %1915 = vmatprep.subr.bf16.mxu0 %v2191_v1 }
 0xbd0   :  { %1916 = vmatpush3.bf16.msra.mxu0 %v2353_v21 }
 0xbd1   :  { %1929 = vmatprep.subr.bf16.mxu0 %v2191_v1 }
 0xc83   :  { %v946_v10 = vpop.f32.mrb[24].mxu1 }
 0xc84   :  { %v952_v11 = vadd.f32 %v946_v10, %v2401_v62  ;;  %v1895_v13 = vpop.f32.mrb[25].mxu1 }
 0xc85   :  { %v949_v14 = vpop.f32.mrb[26].mxu1 }
 0xc86   :  { %2073 = vtanh.f32 %v952_v11  ;;  %v1896_v15 = vpop.f32.mrb[27].mxu1  ;;  %v1742_v26 = vmul.f32 -1.442695, %v952_v11 }
 0xc90   :  { %v2074_v16 = vpop.eup %2073 }
 0xc91   :  { %962 = vrot.lane.b32.xlu0 %v2074_v16, %s2187_s19 }
 0xc9e   :  { %v1018_v18 = vpop.f32.mrb[24].mxu0 }
 0xc9f   :  { %v1024_v19 = vadd.f32 %v1018_v18, %v2398_v60  ;;  %v1903_v22 = vpop.f32.mrb[25].mxu0 }
 0xca0   :  { %v1021_v23 = vpop.f32.mrb[26].mxu0 }
 0xca1   :  { %2075 = vtanh.f32 %v1024_v19  ;;  %v1904_v24 = vpop.f32.mrb[27].mxu0  ;;  %v1744_v28 = vmul.f32 -1.442695, %v1024_v19 }
 0xca2   :  { %2077 = vpow2.f32 %v1742_v26 }
 0xcab   :  { %v2076_v25 = vpop.eup %2075 }
 0xcac   :  { %1034 = vrot.lane.b32.xlu1 %v2076_v25, %s2187_s19  ;;  %v2078_v62 = vpop.eup %2077 }
 0xcad   :  { %v956_v27 = vadd.f32 1.0, %v2078_v62 }
 0xcaf   :  { %2079 = vrcp.f32 %v956_v27 }
 0xcb0   :  { %2081 = vpow2.f32 %v1744_v28 }
 0xcb9   :  { %v2080_v29 = vpop.eup %2079 }
 0xcba   :  { %v2082_v60 = vpop.eup %2081  ;;  %v960_v36 = vmul.f32 %v2080_v29, %v2513_v48 }
 0xcbb   :  { %v1028_v33 = vadd.f32 1.0, %v2082_v60 }
 0xcbd   :  { %2083 = vrcp.f32 %v1028_v33 }
 0xcc7   :  { %v2084_v31 = vpop.eup %2083 }
 0xcc8   :  { %v1032_v39 = vmul.f32 %v2084_v31, %v2518_v2 }
 0xd03   :  { %v963_v30 = vpop.permute.xlu0 %962 }
 0xd04   :  { %v965_v32 = vmul.f32 %v2080_v29, %v963_v30 }
 0xd06   :  { %967 = vrot.lane.b32.xlu0 %v965_v32, %s2193_s3 }
 0xd1e   :  { %v1035_v34 = vpop.permute.xlu1 %1034 }
 0xd1f   :  { %v1037_v35 = vmul.f32 %v2084_v31, %v1035_v34 }
 0xd21   :  { %1039 = vrot.lane.b32.xlu1 %v1037_v35, %s2193_s3  ;;  %v2137_v35 = vld [vmem:[%s2658_s2] sm:$0xff]  }
 0xd78   :  { %v968_v37 = vpop.permute.xlu0 %967 }
 0xd79   :  { %v2545_v59 = vadd.f32 %v968_v37, %v960_v36 }
 0xd7b   :  { %2085 = vtanh.f32 %v2545_v59 }
 0xd85   :  { %v2086_v38 = vpop.eup %2085 }
 0xd86   :  { %973 = vrot.lane.b32.xlu0 %v2086_v38, %s2187_s19 }
 0xd93   :  { %v1040_v40 = vpop.permute.xlu1 %1039 }
 0xd94   :  { %v2550_v41 = vadd.f32 %v1040_v40, %v1032_v39 }
 0xd96   :  { %2087 = vtanh.f32 %v2550_v41 }
 0xda0   :  { %v2088_v42 = vpop.eup %2087 }
 0xda1   :  { %1045 = vrot.lane.b32.xlu1 %v2088_v42, %s2187_s19 }
 0xdf8   :  { %v974_v63 = vpop.permute.xlu0 %973 }
 0xdf9   :  { %v976_v43 = vmul.f32 %v2080_v29, %v974_v63 }
 0xdfb   :  { %v1051_v44 = vpack.c.bf16 %v976_v43, %v976_v43 }
 0xdfd   :  { %1053 = vrot.lane.b32.xlu0 %v1051_v44, %s2193_s3 }
 0xe13   :  { %v1046_v45 = vpop.permute.xlu1 %1045 }
 0xe14   :  { %v1048_v46 = vmul.f32 %v2084_v31, %v1046_v45 }
 0xe16   :  { %v1123_v57 = vpack.c.bf16 %v1048_v46, %v1048_v46 }
 0xe18   :  { %1125 = vrot.lane.b32.xlu1 %v1123_v57, %s2193_s3 }
 0xe6f   :  { %v1054_v47 = vpop.permute.xlu0 %1053 }
 0xe70   :  { %1910 = vmatmul.mubr.msk.bf16.vlgmr.msra.gmra.mrb[28].mxu1 %vm301_vm10, %v1054_v47 }
 0xe71   :  { %1922 = vmatpush3.bf16.msra.mxu1 %v2309_v12  ;;  %1925 = vmatprep.mubr.msk.bf16.mxu1 %vm2192_vm0, %v2191_v1 }
 0xe72   :  { %1923 = vmatprep.subr.bf16.mxu1 %v2191_v1 }
 0xe75   :  { %1924 = vmatpush3.bf16.msra.mxu1 %v2328_v17 }
 0xe76   :  { %1937 = vmatprep.subr.bf16.mxu1 %v2191_v1 }
 0xe8a   :  { %v1126_v48 = vpop.permute.xlu1 %1125 }
 0xe8b   :  { %1918 = vmatmul.mubr.msk.bf16.vlgmr.msra.gmra.mrb[28].mxu0 %vm301_vm10, %v1126_v48 }
 0xe8c   :  { %1930 = vmatpush3.bf16.msra.mxu0 %v2347_v20  ;;  %1933 = vmatprep.mubr.msk.bf16.mxu0 %vm2192_vm0, %v2191_v1 }
 0xe8d   :  { %1931 = vmatprep.subr.bf16.mxu0 %v2191_v1 }
 0xe90   :  { %1932 = vmatpush3.bf16.msra.mxu0 %v2353_v21 }
 0xe91   :  { %1945 = vmatprep.subr.bf16.mxu0 %v2191_v1 }
 0xf43   :  { %v1092_v12 = vpop.f32.mrb[28].mxu1 }
 0xf44   :  { %v1098_v49 = vadd.f32 %v1092_v12, %v2405_v0  ;;  %v1911_v50 = vpop.f32.mrb[29].mxu1 }
 0xf45   :  { %v1095_v51 = vpop.f32.mrb[30].mxu1 }
 0xf46   :  { %2089 = vtanh.f32 %v1098_v49  ;;  %v1912_v2 = vpop.f32.mrb[31].mxu1  ;;  %v1746_v9 = vmul.f32 -1.442695, %v1098_v49 }
 0xf50   :  { %v2090_v52 = vpop.eup %2089 }
 0xf51   :  { %1108 = vrot.lane.b32.xlu0 %v2090_v52, %s2187_s19 }
 0xf5e   :  { %v1164_v53 = vpop.f32.mrb[28].mxu0 }
 0xf5f   :  { %v1170_v55 = vadd.f32 %v1164_v53, %v2394_v58  ;;  %v1919_v61 = vpop.f32.mrb[29].mxu0 }
 0xf60   :  { %v1167_v6 = vpop.f32.mrb[30].mxu0 }
 0xf61   :  { %2091 = vtanh.f32 %v1170_v55  ;;  %v1920_v7 = vpop.f32.mrb[31].mxu0  ;;  %v1748_v10 = vmul.f32 -1.442695, %v1170_v55 }
 0xf62   :  { %2093 = vpow2.f32 %v1746_v9 }
 0xf6b   :  { %v2092_v8 = vpop.eup %2091 }
 0xf6c   :  { %1180 = vrot.lane.b32.xlu1 %v2092_v8, %s2187_s19  ;;  %v2094_v0 = vpop.eup %2093 }
 0xf6d   :  { %v1102_v4 = vadd.f32 1.0, %v2094_v0 }
 0xf6f   :  { %2095 = vrcp.f32 %v1102_v4 }
 0xf70   :  { %2097 = vpow2.f32 %v1748_v10 }
 0xf79   :  { %v2096_v11 = vpop.eup %2095 }
 0xf7a   :  { %v2098_v58 = vpop.eup %2097  ;;  %v1106_v22 = vmul.f32 %v2096_v11, %v2545_v59 }
 0xf7b   :  { %v1174_v15 = vadd.f32 1.0, %v2098_v58 }
 0xf7d   :  { %2099 = vrcp.f32 %v1174_v15 }
 0xf87   :  { %v2100_v16 = vpop.eup %2099 }
 0xf88   :  { %v1178_v26 = vmul.f32 %v2100_v16, %v2550_v41 }
 0xfc3   :  { %v1109_v13 = vpop.permute.xlu0 %1108 }
 0xfc4   :  { %v1111_v14 = vmul.f32 %v2096_v11, %v1109_v13 }
 0xfc6   :  { %1113 = vrot.lane.b32.xlu0 %v1111_v14, %s2193_s3 }
 0xfde   :  { %v1181_v18 = vpop.permute.xlu1 %1180 }
 0xfdf   :  { %v1183_v19 = vmul.f32 %v2100_v16, %v1181_v18 }
 0xfe1   :  { %1185 = vrot.lane.b32.xlu1 %v1183_v19, %s2193_s3 }
0x1038   :  { %v1114_v23 = vpop.permute.xlu0 %1113 }
0x1039   :  { %v2577_v24 = vadd.f32 %v1114_v23, %v1106_v22 }
0x103b   :  { %2101 = vtanh.f32 %v2577_v24 }
0x1045   :  { %v2102_v25 = vpop.eup %2101 }
0x1046   :  { %1119 = vrot.lane.b32.xlu0 %v2102_v25, %s2187_s19 }
0x1053   :  { %v1186_v62 = vpop.permute.xlu1 %1185 }
0x1054   :  { %v2582_v27 = vadd.f32 %v1186_v62, %v1178_v26 }
0x1056   :  { %2103 = vtanh.f32 %v2582_v27 }
0x1060   :  { %v2104_v28 = vpop.eup %2103 }
0x1061   :  { %1191 = vrot.lane.b32.xlu1 %v2104_v28, %s2187_s19 }
0x10b8   :  { %v1120_v29 = vpop.permute.xlu0 %1119 }
0x10b9   :  { %v1122_v30 = vmul.f32 %v2096_v11, %v1120_v29 }
0x10bb   :  { %v1197_v32 = vpack.c.bf16 %v1122_v30, %v1122_v30 }
0x10bd   :  { %1199 = vrot.lane.b32.xlu0 %v1197_v32, %s2193_s3 }
0x10d3   :  { %v1192_v60 = vpop.permute.xlu1 %1191 }
0x10d4   :  { %v1194_v33 = vmul.f32 %v2100_v16, %v1192_v60 }
0x10d6   :  { %v1269_v31 = vpack.c.bf16 %v1194_v33, %v1194_v33 }
0x10d8   :  { %1271 = vrot.lane.b32.xlu1 %v1269_v31, %s2193_s3 }
0x112f   :  { %v1200_v34 = vpop.permute.xlu0 %1199 }
0x1130   :  { %1926 = vmatmul.mubr.msk.bf16.vlgmr.msra.gmra.mrb[32].mxu1 %vm301_vm10, %v1200_v34 }
0x1131   :  { %1938 = vmatpush3.bf16.msra.mxu1 %v2137_v35  ;;  %1941 = vmatprep.mubr.msk.bf16.mxu1 %vm2192_vm0, %v2191_v1 }
0x1132   :  { %1939 = vmatprep.subr.bf16.mxu1 %v2191_v1 }
0x1135   :  { %1940 = vmatpush3.bf16.msra.mxu1 %v2328_v17 }
0x1136   :  { %1953 = vmatprep.subr.bf16.mxu1 %v2191_v1 }
0x114a   :  { %v1272_v36 = vpop.permute.xlu1 %1271 }
0x114b   :  { %1934 = vmatmul.mubr.msk.bf16.vlgmr.msra.gmra.mrb[32].mxu0 %vm301_vm10, %v1272_v36 }
0x114c   :  { %1946 = vmatpush3.bf16.msra.mxu0 %v2347_v20  ;;  %1949 = vmatprep.mubr.msk.bf16.mxu0 %vm2192_vm0, %v2191_v1 }
0x114d   :  { %1947 = vmatprep.subr.bf16.mxu0 %v2191_v1 }
0x1150   :  { %1948 = vmatpush3.bf16.msra.mxu0 %v2353_v21 }
0x1151   :  { %1961 = vmatprep.subr.bf16.mxu0 %v2191_v1 }
0x1203   :  { %v1238_v37 = vpop.f32.mrb[32].mxu1 }
0x1204   :  { %v1244_v59 = vadd.f32 %v1238_v37, %v2409_v3  ;;  %v1927_v17 = vpop.f32.mrb[33].mxu1 }
0x1205   :  { %v1241_v38 = vpop.f32.mrb[34].mxu1 }
0x1206   :  { %2105 = vtanh.f32 %v1244_v59  ;;  %v1928_v39 = vpop.f32.mrb[35].mxu1  ;;  %v1750_v44 = vmul.f32 -1.442695, %v1244_v59 }
0x1210   :  { %v2106_v40 = vpop.eup %2105 }
0x1211   :  { %1254 = vrot.lane.b32.xlu0 %v2106_v40, %s2187_s19 }
0x121e   :  { %v1310_v20 = vpop.f32.mrb[32].mxu0 }
0x121f   :  { %v1316_v41 = vadd.f32 %v1310_v20, %v2390_v56  ;;  %v1935_v42 = vpop.f32.mrb[33].mxu0 }
0x1220   :  { %v1313_v63 = vpop.f32.mrb[34].mxu0  ;;  %v2003_v42 = vld [vmem:[#allocation3] sm:$0xff]  }
0x1221   :  { %2107 = vtanh.f32 %v1316_v41  ;;  %v1936_v43 = vpop.f32.mrb[35].mxu0  ;;  %v1752_v46 = vmul.f32 -1.442695, %v1316_v41  ;;  %v2004_v63 = vld [vmem:[#allocation3 + $0x8] sm:$0xff]  }
0x1222   :  { %2109 = vpow2.f32 %v1750_v44  ;;  %v2006_v44 = vld [vmem:[#allocation5 + $0x8] sm:$0xff]  }
0x122b   :  { %v2108_v21 = vpop.eup %2107 }
0x122c   :  { %1326 = vrot.lane.b32.xlu1 %v2108_v21, %s2187_s19  ;;  %v2110_v3 = vpop.eup %2109  ;;  %v2005_v21 = vld [vmem:[#allocation5] sm:$0xff]  }
0x122d   :  { %v1248_v45 = vadd.f32 1.0, %v2110_v3 }
0x122f   :  { %2111 = vrcp.f32 %v1248_v45 }
0x1230   :  { %2113 = vpow2.f32 %v1752_v46 }
0x1239   :  { %v2112_v57 = vpop.eup %2111 }
0x123a   :  { %v2114_v56 = vpop.eup %2113  ;;  %v1252_v2 = vmul.f32 %v2112_v57, %v2577_v24 }
0x123b   :  { %v1320_v12 = vadd.f32 1.0, %v2114_v56 }
0x123d   :  { %2115 = vrcp.f32 %v1320_v12 }
0x1247   :  { %v2116_v49 = vpop.eup %2115 }
0x1248   :  { %v1324_v61 = vmul.f32 %v2116_v49, %v2582_v27 }
0x1283   :  { %v1255_v47 = vpop.permute.xlu0 %1254 }
0x1284   :  { %v1257_v48 = vmul.f32 %v2112_v57, %v1255_v47 }
0x1286   :  { %1259 = vrot.lane.b32.xlu0 %v1257_v48, %s2193_s3 }
0x129e   :  { %v1327_v50 = vpop.permute.xlu1 %1326 }
0x129f   :  { %v1329_v51 = vmul.f32 %v2116_v49, %v1327_v50  ;;  %v2008_v50 = vld [vmem:[%s2663_s7 + $0x8] sm:$0xff]  }
0x12a1   :  { %1331 = vrot.lane.b32.xlu1 %v1329_v51, %s2193_s3 }
0x12f8   :  { %v1260_v52 = vpop.permute.xlu0 %1259 }
0x12f9   :  { %v1262_v53 = vadd.f32 %v1260_v52, %v1252_v2 }
0x12fb   :  { %2117 = vtanh.f32 %v1262_v53 }
0x1305   :  { %v2118_v55 = vpop.eup %2117 }
0x1306   :  { %1265 = vrot.lane.b32.xlu0 %v2118_v55, %s2187_s19 }
0x1313   :  { %v1332_v6 = vpop.permute.xlu1 %1331 }
0x1314   :  { %v1334_v7 = vadd.f32 %v1332_v6, %v1324_v61  ;;  %v1763_v61 = vld [vmem:[%s2662_s6] ss:$0 sm:$0xff] }
0x1316   :  { %2119 = vtanh.f32 %v1334_v7 }
0x1320   :  { %v2120_v8 = vpop.eup %2119 }
0x1321   :  { %1337 = vrot.lane.b32.xlu1 %v2120_v8, %s2187_s19 }
0x1378   :  { %v1266_v9 = vpop.permute.xlu0 %1265 }
0x1379   :  { %v1268_v0 = vmul.f32 %v2112_v57, %v1266_v9 }
0x137b   :  { %v1343_v4 = vpack.c.bf16 %v1268_v0, %v1268_v0 }
0x137d   :  { %1345 = vrot.lane.b32.xlu0 %v1343_v4, %s2193_s3 }
0x1393   :  { %v1338_v10 = vpop.permute.xlu1 %1337 }
0x1394   :  { %v1340_v11 = vmul.f32 %v2116_v49, %v1338_v10  ;;  %v2007_v49 = vld [vmem:[%s2663_s7] sm:$0xff]  }
0x1395   :  { %v1764_v10 = vld [vmem:[%s2664_s8] ss:$0 sm:$0xff] }
0x1396   :  { %v1415_v13 = vpack.c.bf16 %v1340_v11, %v1340_v11 }
0x1398   :  { %1417 = vrot.lane.b32.xlu1 %v1415_v13, %s2193_s3 }
0x13ef   :  { %v1346_v14 = vpop.permute.xlu0 %1345 }
0x13f0   :  { %1942 = vmatmul.mubr.msk.bf16.vlgmr.msra.gmra.mrb[36].mxu1 %vm301_vm10, %v1346_v14 }
0x13f1   :  { %1957 = vmatprep.mubr.msk.bf16.mxu1 %vm2192_vm0, %v2191_v1  ;;  %1954 = vmatpush3.bf16.msra.mxu1 %v2005_v21 }
0x13f2   :  { %1955 = vmatprep.subr.bf16.mxu1 %v2191_v1 }
0x13f5   :  { %1956 = vmatpush3.bf16.msra.mxu1 %v2006_v44 }
0x13f6   :  { %1969 = vmatprep.subr.bf16.mxu1 %v2191_v1 }
0x140a   :  { %v1418_v58 = vpop.permute.xlu1 %1417 }
0x140b   :  { %1950 = vmatmul.mubr.msk.bf16.vlgmr.msra.gmra.mrb[36].mxu0 %vm301_vm10, %v1418_v58 }
0x140c   :  { %1965 = vmatprep.mubr.msk.bf16.mxu0 %vm2192_vm0, %v2191_v1  ;;  %1962 = vmatpush3.bf16.msra.mxu0 %v2003_v42 }
0x140d   :  { %1963 = vmatprep.subr.bf16.mxu0 %v2191_v1 }
0x1410   :  { %1964 = vmatpush3.bf16.msra.mxu0 %v2004_v63 }
0x14c3   :  { %v1384_v15 = vpop.f32.mrb[36].mxu1 }
0x14c4   :  { %v1390_v16 = vadd.f32 %v1384_v15, %v2413_v5  ;;  %v1943_v18 = vpop.f32.mrb[37].mxu1 }
0x14c5   :  { %v1387_v19 = vpop.f32.mrb[38].mxu1 }
0x14c6   :  { %2121 = vtanh.f32 %v1390_v16  ;;  %v1944_v22 = vpop.f32.mrb[39].mxu1  ;;  %v1754_v29 = vmul.f32 -1.442695, %v1390_v16 }
0x14d0   :  { %v2122_v23 = vpop.eup %2121 }
0x14d1   :  { %1400 = vrot.lane.b32.xlu0 %v2122_v23, %s2187_s19 }
0x14de   :  { %v1456_v24 = vpop.f32.mrb[36].mxu0 }
0x14df   :  { %v1462_v25 = vadd.f32 %v1456_v24, %v2386_v54  ;;  %v1951_v26 = vpop.f32.mrb[37].mxu0 }
0x14e0   :  { %v1459_v62 = vpop.f32.mrb[38].mxu0 }
0x14e1   :  { %2123 = vtanh.f32 %v1462_v25  ;;  %v1952_v27 = vpop.f32.mrb[39].mxu0  ;;  %v1756_v32 = vmul.f32 -1.442695, %v1462_v25 }
0x14e2   :  { %2125 = vpow2.f32 %v1754_v29 }
0x14eb   :  { %v2124_v28 = vpop.eup %2123 }
0x14ec   :  { %1472 = vrot.lane.b32.xlu1 %v2124_v28, %s2187_s19  ;;  %v2126_v5 = vpop.eup %2125 }
0x14ed   :  { %v1394_v30 = vadd.f32 1.0, %v2126_v5 }
0x14ef   :  { %2127 = vrcp.f32 %v1394_v30 }
0x14f0   :  { %2129 = vpow2.f32 %v1756_v32 }
0x14f9   :  { %v2128_v60 = vpop.eup %2127 }
0x14fa   :  { %v2130_v54 = vpop.eup %2129  ;;  %v1398_v59 = vmul.f32 %v2128_v60, %v1262_v53 }
0x14fb   :  { %v1466_v34 = vadd.f32 1.0, %v2130_v54 }
0x14fd   :  { %2131 = vrcp.f32 %v1466_v34 }
0x1507   :  { %v2132_v35 = vpop.eup %2131 }
0x1508   :  { %v1470_v40 = vmul.f32 %v2132_v35, %v1334_v7 }
0x1543   :  { %v1401_v33 = vpop.permute.xlu0 %1400 }
0x1544   :  { %v1403_v31 = vmul.f32 %v2128_v60, %v1401_v33 }
0x1546   :  { %1405 = vrot.lane.b32.xlu0 %v1403_v31, %s2193_s3 }
0x155e   :  { %v1473_v36 = vpop.permute.xlu1 %1472 }
0x155f   :  { %v1475_v37 = vmul.f32 %v2132_v35, %v1473_v36 }
0x1561   :  { %1477 = vrot.lane.b32.xlu1 %v1475_v37, %s2193_s3 }
0x15b8   :  { %v1406_v17 = vpop.permute.xlu0 %1405 }
0x15b9   :  { %v1408_v38 = vadd.f32 %v1406_v17, %v1398_v59 }
0x15bb   :  { %2133 = vtanh.f32 %v1408_v38 }
0x15c5   :  { %v2134_v39 = vpop.eup %2133 }
0x15c6   :  { %1411 = vrot.lane.b32.xlu0 %v2134_v39, %s2187_s19 }
0x15d3   :  { %v1478_v20 = vpop.permute.xlu1 %1477 }
0x15d4   :  { %v1480_v41 = vadd.f32 %v1478_v20, %v1470_v40 }
0x15d6   :  { %2135 = vtanh.f32 %v1480_v41 }
0x15e0   :  { %v2136_v43 = vpop.eup %2135 }
0x15e1   :  { %1483 = vrot.lane.b32.xlu1 %v2136_v43, %s2187_s19 }
0x1638   :  { %v1412_v3 = vpop.permute.xlu0 %1411 }
0x1639   :  { %v1414_v45 = vmul.f32 %v2128_v60, %v1412_v3 }
0x163b   :  { %v1487_v46 = vpack.c.bf16 %v1414_v45, %v1414_v45 }
0x163d   :  { %1556 = vrot.lane.b32.xlu1 %v1487_v46, %s2193_s3 }
0x1653   :  { %v1484_v57 = vpop.permute.xlu1 %1483 }
0x1654   :  { %v1486_v47 = vmul.f32 %v2132_v35, %v1484_v57 }
0x1656   :  { %v1492_v48 = vpack.c.bf16 %v1486_v47, %v1486_v47 }
0x1658   :  { %1498 = vrot.lane.b32.xlu0 %v1492_v48, %s2193_s3 }
0x16af   :  { %v1557_v56 = vpop.permute.xlu1 %1556 }
0x16b0   :  { %1966 = vmatmul.mubr.msk.bf16.vlgmr.msra.gmra.mrb[40].mxu0 %vm301_vm10, %v1557_v56 }
0x16ca   :  { %v1499_v12 = vpop.permute.xlu0 %1498 }
0x16cb   :  { %1958 = vmatmul.mubr.msk.bf16.vlgmr.msra.gmra.mrb[40].mxu1 %vm301_vm10, %v1499_v12 }
0x16cc   :  { %1973 = vmatprep.mubr.msk.bf16.mxu1 %vm2192_vm0, %v2191_v1  ;;  %1970 = vmatpush3.bf16.msra.mxu1 %v2007_v49 }
0x16cd   :  { %1971 = vmatprep.subr.bf16.mxu1 %v2191_v1 }
0x16d0   :  { %1972 = vmatpush3.bf16.msra.mxu1 %v2008_v50 }
0x1783   :  { %v1607_v51 = vpop.f32.mrb[40].mxu0 }
0x1784   :  { %v1967_v2 = vpop.f32.mrb[41].mxu0 }
0x1785   :  { %v1610_v52 = vpop.f32.mrb[42].mxu0 }
0x1786   :  { %v1968_v53 = vpop.f32.mrb[43].mxu0 }
0x179e   :  { %v1549_v55 = vpop.f32.mrb[40].mxu1 }
0x179f   :  { %v1608_v6 = vadd.f32 %v1607_v51, %v1549_v55  ;;  %v1959_v7 = vpop.f32.mrb[41].mxu1 }
0x17a0   :  { %v1552_v8 = vpop.f32.mrb[42].mxu1 }
0x17a1   :  { %v1620_v9 = vadd.f32 %v1763_v61, %v1608_v6  ;;  %v1960_v0 = vpop.f32.mrb[43].mxu1 }
0x17a3   :  { %v1621_v1 = vmax.f32 %v1620_v9, 0.0 }
0x17a5   :  { %v1622_v4 = vpack.c.bf16 %v1621_v1, %v1621_v1 }
0x17a7   :  { %1974 = vmatmul.mubr.msk.bf16.vlgmr.msra.gmra.mrb[44].mxu1 %vm301_vm10, %v1622_v4 }
0x187a   :  { %v1683_v11 = vpop.f32.mrb[44].mxu1 }
0x187b   :  { %v1684_v13 = vadd.f32 %v1764_v10, %v1683_v11  ;;  %v1975_v14 = vpop.f32.mrb[45].mxu1 }
0x187c   :  { %v1686_v58 = vpop.f32.mrb[46].mxu1 }
0x187d   :  { %1689 = vst [vmem:[%s2665_s9] sm:$0xff] %v1684_v13  ;;  %v1976_v15 = vpop.f32.mrb[47].mxu1 }
0x187e   :  { %1694 = vsyncpa [#allocation4], 1 }
0x187f   :  { %1695 = vsyncpa [#allocation6], 1 }

</bundles_post_ra>
